<compile_context>
chip_gen: v7x
topology: tpu7x:2x2x1
jax: 0.10.0
libtpu: 0.0.40
codegen_flags: <defaults>
</compile_context>

<pallas_src>
import jax
import jax.numpy as jnp
from jax import lax
from jax.experimental import pallas as pl
from jax.experimental.pallas import tpu as pltpu


def _cdiv(a, b):
    return -(-a // b)


def _plan_tiles(B, C, d, pred_isz, tf_isz, core_splits, tb=None):
    """Batch-tile / core-split / VMEM plan.

    Budgets double-buffered inputs AND in-kernel temporaries (f32 gram, f32 diff,
    bf16 copy of A, f32 pred/one-hot) against the actual chip's VMEM capacity, and
    returns an explicit vmem_limit_bytes for the compiler.
    """
    try:
        cap = int(pltpu.get_tpu_info().vmem_capacity_bytes)
    except Exception:
        cap = 64 * 1024 * 1024                      # conservative (v7x-sized) fallback
    if not cap or cap < 32 * 1024 * 1024:
        cap = 64 * 1024 * 1024
    budget = min(cap // 2, 48 * 1024 * 1024)        # keep double-buffer + v7x headroom
    per_row_in = 2 * (C * pred_isz + 4 + d * d * tf_isz)        # x2 = double buffers
    per_row_tmp = d * d * (4 + 4 + 2) + C * 12                  # gram + diff + bf16 A + f32 pred/onehot
    per_row = per_row_in + per_row_tmp

    if tb is None:
        tb_budget = max(8, budget // per_row)
        tb_target = _cdiv(_cdiv(B, core_splits), 8) * 8         # ~one tile per core slot
        TB = min(tb_budget, tb_target)
    else:
        TB = tb
    if TB >= B:
        TB = B                                      # full batch dim: block == array dim
    else:
        TB = max(8, (TB // 8) * 8)                  # sublane-aligned partial tiles

    nb = _cdiv(B, TB)
    cs = max(1, min(core_splits, nb))
    nbi = _cdiv(nb, cs)
    need_clamp = nb != nbi * cs                     # last core slot has padded grid steps
    needs_mask = (B != nb * TB) or need_clamp
    vmem_limit = int(min(cap - 8 * 1024 * 1024,
                         max(32 * 1024 * 1024,
                             int(TB * per_row * 1.25) + 4 * 1024 * 1024)))
    return TB, nb, cs, nbi, needs_mask, need_clamp, vmem_limit


def _nll_partial(pred_ref, tgt_ref, row0, B, needs_mask):
    """Masked  sum_i pred[i, target[i]]  for the current batch tile -> (1, 1)."""
    pred = pred_ref[...].astype(jnp.float32)                  # (TB, C) f32 VPU math
    tgt = tgt_ref[...]                                        # (TB, 1) int32
    tb, C = pred.shape
    col = lax.broadcasted_iota(jnp.int32, (tb, C), 1)
    onehot = col == tgt
    valid = None
    if needs_mask:                                            # only for ragged/padded tiles
        row = row0 + lax.broadcasted_iota(jnp.int32, (tb, 1), 0)
        valid = row < B
        onehot = onehot & valid
    picked = jnp.where(onehot, pred, 0.0)
    part = jnp.sum(jnp.sum(picked, axis=1, keepdims=True), axis=0, keepdims=True)
    return part, valid


def _make_fused_kernel(B, TB, nbi, scale, needs_mask, mm_dtype):
    inv_b = 1.0 / B

    def kernel(pred_ref, tgt_ref, tf_ref, out_ref):
        c = pl.program_id(0)
        i = pl.program_id(1)

        @pl.when(i == 0)
        def _():
            out_ref[...] = jnp.zeros_like(out_ref)

        row0 = (c * nbi + i) * TB
        nll_part, valid = _nll_partial(pred_ref, tgt_ref, row0, B, needs_mask)

        # Feature-transform regularizer: ||A A^T - I||_F per example.
        # bf16 MXU inputs + f32 accumulation (MXU is bf16-native on v5e/v6e/v7x).
        a = tf_ref[...].astype(mm_dtype)                       # (TB, d, d)
        d = a.shape[-1]
        gram = jnp.einsum("bij,bkj->bik", a, a,
                          preferred_element_type=jnp.float32)  # (TB, d, d) f32
        ii = lax.broadcasted_iota(jnp.int32, (d, d), 0)
        kk = lax.broadcasted_iota(jnp.int32, (d, d), 1)
        eye = (ii == kk).astype(jnp.float32)                   # (d, d)
        diff = gram - eye                                      # direct (gram - I): no cancellation
        fro2 = jnp.sum(jnp.sum(diff * diff, axis=2), axis=1, keepdims=True)   # (TB, 1)
        if needs_mask:
            fro2 = jnp.where(valid, fro2, 0.0)                 # mask padded rows before sqrt
        fro = jnp.sqrt(fro2)
        md_part = jnp.sum(fro, axis=0, keepdims=True)          # (1, 1)

        # Accumulate straight into the per-core resident output block.
        out_ref[...] = out_ref[...] + (jnp.float32(scale * inv_b) * md_part
                                       - jnp.float32(inv_b) * nll_part)
    return kernel


def _make_nll_kernel(B, TB, nbi, needs_mask):
    inv_b = 1.0 / B

    def kernel(pred_ref, tgt_ref, out_ref):
        c = pl.program_id(0)
        i = pl.program_id(1)

        @pl.when(i == 0)
        def _():
            out_ref[...] = jnp.zeros_like(out_ref)

        row0 = (c * nbi + i) * TB
        nll_part, _ = _nll_partial(pred_ref, tgt_ref, row0, B, needs_mask)
        out_ref[...] = out_ref[...] - jnp.float32(inv_b) * nll_part
    return kernel


def cls_loss_forward(pred, target, trans_feat, mat_diff_loss_scale=0.001,
                     model_name="", tb=None, core_splits=2, use_bf16_gram=True):
    """Forward pass of cls_loss (NLL + optional feature-transform regularizer)."""
    B, C = pred.shape
    tgt2d = target.astype(jnp.int32).reshape(B, 1)
    use_reg = model_name in ("PointNet", "PointNet_Seg")
    d = trans_feat.shape[1] if use_reg else 0
    pred_isz = pred.dtype.itemsize
    tf_isz = trans_feat.dtype.itemsize if use_reg else 0

    TB, nb, cs, nbi, needs_mask, need_clamp, vmem_limit = _plan_tiles(
        B, C, d, pred_isz, tf_isz, core_splits, tb)

    if need_clamp:
        # Last core slot may have padded grid steps: clamp to the last real tile,
        # whose rows are then fully masked out inside the kernel (row >= B).
        def blk(c, i):
            return jnp.minimum(c * nbi + i, nb - 1)
    else:
        def blk(c, i):
            return c * nbi + i

    grid = (cs, nbi)
    out_shape = jax.ShapeDtypeStruct((cs, 1, 1), jnp.float32)
    out_spec = pl.BlockSpec((None, 1, 1), lambda c, i: (c, 0, 0))
    cparams = pltpu.CompilerParams(
        dimension_semantics=("parallel", "arbitrary"),
        vmem_limit_bytes=vmem_limit)

    if use_reg:
        mm_dtype = jnp.bfloat16 if use_bf16_gram else trans_feat.dtype
        cost = pl.CostEstimate(
            flops=int(B * (2 * d * d * d + 4 * d * d + 4 * C)),
            transcendentals=int(B),
            bytes_accessed=int(pred.size * pred_isz + B * 4
                               + trans_feat.size * tf_isz + 4 * cs))
        out = pl.pallas_call(
            _make_fused_kernel(B, TB, nbi, float(mat_diff_loss_scale),
                               needs_mask, mm_dtype),
            out_shape=out_shape,
            grid_spec=pltpu.PrefetchScalarGridSpec(
                num_scalar_prefetch=0,
                grid=grid,
                in_specs=[pl.BlockSpec((TB, C), lambda c, i: (blk(c, i), 0)),
                          pl.BlockSpec((TB, 1), lambda c, i: (blk(c, i), 0)),
                          # If v5e profiling shows this DMA exposed, add
                          # pipeline_mode=pl.Buffered(3) to this spec.
                          pl.BlockSpec((TB, d, d), lambda c, i: (blk(c, i), 0, 0))],
                out_specs=out_spec),
            compiler_params=cparams,
            cost_estimate=cost,
        )(pred, tgt2d, trans_feat)
    else:
        cost = pl.CostEstimate(
            flops=int(4 * B * C),
            transcendentals=0,
            bytes_accessed=int(pred.size * pred_isz + B * 4 + 4 * cs))
        out = pl.pallas_call(
            _make_nll_kernel(B, TB, nbi, needs_mask),
            out_shape=out_shape,
            grid_spec=pltpu.PrefetchScalarGridSpec(
                num_scalar_prefetch=0,
                grid=grid,
                in_specs=[pl.BlockSpec((TB, C), lambda c, i: (blk(c, i), 0)),
                          pl.BlockSpec((TB, 1), lambda c, i: (blk(c, i), 0))],
                out_specs=out_spec),
            compiler_params=cparams,
            cost_estimate=cost,
        )(pred, tgt2d)
    # Per-core partial losses -> scalar loss (tiny combine outside the kernel).
    return jnp.sum(out)


if __name__ == "__main__":
    key = jax.random.PRNGKey(0)
    k1, k2, k3 = jax.random.split(key, 3)

    B, C, d = 20, 16, 32
    logits = jax.random.normal(k1, (B, C), dtype=jnp.float32)
    pred = jax.nn.log_softmax(logits, axis=-1)          # nll_loss expects log-probs
    target = jax.random.randint(k2, (B,), 0, C, dtype=jnp.int32)
    trans_feat = jax.random.normal(k3, (B, d, d), dtype=jnp.float32) * 0.1

    # Pure-JAX reference (matches the PyTorch module semantics).
    nll_ref = -jnp.mean(pred[jnp.arange(B), target])
    gram = jnp.einsum("bij,bkj->bik", trans_feat, trans_feat)
    diff = gram - jnp.eye(d)[None]
    md_ref = jnp.mean(jnp.sqrt(jnp.sum(diff * diff, axis=(1, 2))))
    ref_full = nll_ref + md_ref * 0.001

    # 1) Fused path, auto tile plan (2-way core split; serial on 1-TC chips).
    loss_auto = jax.block_until_ready(
        cls_loss_forward(pred, target, trans_feat, 0.001, "PointNet"))
    # 2) Forced small tiles: ragged tail + uneven core split (clamped index map + mask).
    loss_ragged = jax.block_until_ready(
        cls_loss_forward(pred, target, trans_feat, 0.001, "PointNet", tb=8))
    # 3) Single full-batch tile, one core slot (unmasked path, TB == B).
    loss_single = jax.block_until_ready(
        cls_loss_forward(pred, target, trans_feat, 0.001, "PointNet", core_splits=1))
    # 4) NLL-only path (model without the feature-transform regularizer).
    loss_nll = jax.block_until_ready(
        cls_loss_forward(pred, target, trans_feat, 0.001, ""))
    # 5) Exactly-divisible case (B % TB == 0, even core split): unmasked tiled kernel.
    B2 = 16
    loss_even = jax.block_until_ready(
        cls_loss_forward(pred[:B2], target[:B2], trans_feat[:B2], 0.001,
                         "PointNet", tb=8))
    nll2 = -jnp.mean(pred[:B2][jnp.arange(B2), target[:B2]])
    diff2 = (jnp.einsum("bij,bkj->bik", trans_feat[:B2], trans_feat[:B2])
             - jnp.eye(d)[None])
    ref_even = nll2 + 0.001 * jnp.mean(jnp.sqrt(jnp.sum(diff2 * diff2, axis=(1, 2))))

    rtol, atol = 1e-5, 2e-5   # bf16 gram inputs; regularizer term is scaled by 1e-3
    assert jnp.allclose(loss_auto, ref_full, rtol=rtol, atol=atol), (loss_auto, ref_full)
    assert jnp.allclose(loss_ragged, ref_full, rtol=rtol, atol=atol), (loss_ragged, ref_full)
    assert jnp.allclose(loss_single, ref_full, rtol=rtol, atol=atol), (loss_single, ref_full)
    assert jnp.allclose(loss_nll, nll_ref, rtol=rtol, atol=atol), (loss_nll, nll_ref)
    assert jnp.allclose(loss_even, ref_even, rtol=rtol, atol=atol), (loss_even, ref_even)
    print("KERNEL_OK")
</pallas_src>

<mosaic_0001>
module attributes {stable_mosaic.version = 11 : i64} {
  func.func @kernel(%arg0: i32, %arg1: i32, %arg2: memref<16x16xf32, #tpu.memory_space<vmem>>, %arg3: memref<16x1xi32, #tpu.memory_space<vmem>>, %arg4: memref<16x32x32xf32, #tpu.memory_space<vmem>>, %arg5: memref<1x1x1xf32, #tpu.memory_space<vmem>>) attributes {dimension_semantics = [#tpu.dimension_semantics<parallel>, #tpu.dimension_semantics<arbitrary>], iteration_bounds = array<i64: 2, 1>, scalar_prefetch = 0 : i64, scratch_operands = 0 : i64, tpu.core_type = #tpu.core_type<tc>, window_params = [{transform_indices = @transform_0, window_bounds = array<i64: 16, 16>}, {transform_indices = @transform_1, window_bounds = array<i64: 16, 1>}, {transform_indices = @transform_2, window_bounds = array<i64: 16, 32, 32>}, {transform_indices = @transform_3, window_bounds = array<i64: 1, 1, 1>}]} {
    %c0_i32 = arith.constant 0 : i32
    %0 = arith.cmpi eq, %arg1, %c0_i32 : i32
    %1 = arith.extui %0 : i1 to i32
    %c0_i32_0 = arith.constant 0 : i32
    %2 = arith.cmpi ne, %1, %c0_i32_0 : i32
    scf.if %2 {
      %cst_22 = arith.constant 0.000000e+00 : f32
      %55 = vector.broadcast %cst_22 : f32 to vector<1x1xf32>
      %c0_23 = arith.constant 0 : index
      %c0_24 = arith.constant 0 : index
      %c0_25 = arith.constant 0 : index
      %56 = vector.load %arg5[%c0_23, %c0_24, %c0_25] : memref<1x1x1xf32, #tpu.memory_space<vmem>>, vector<1x1x1xf32>
      %57 = vector.shape_cast %56 : vector<1x1x1xf32> to vector<1x1xf32>
      %58 = vector.shape_cast %55 : vector<1x1xf32> to vector<1x1x1xf32>
      tpu.vector_store %arg5[%c0_23, %c0_24, %c0_25], %58 {strides = array<i32>} : memref<1x1x1xf32, #tpu.memory_space<vmem>>, vector<1x1x1xf32>,
    } else {
    }
    %c1_i32 = arith.constant 1 : i32
    %3 = arith.muli %arg0, %c1_i32 : i32
    %4 = arith.addi %3, %arg1 : i32
    %c16_i32 = arith.constant 16 : i32
    %5 = arith.muli %4, %c16_i32 : i32
    %c0 = arith.constant 0 : index
    %c0_1 = arith.constant 0 : index
    %6 = vector.load %arg2[%c0, %c0_1] : memref<16x16xf32, #tpu.memory_space<vmem>>, vector<16x16xf32>
    %c0_2 = arith.constant 0 : index
    %c0_3 = arith.constant 0 : index
    %7 = vector.load %arg3[%c0_2, %c0_3] : memref<16x1xi32, #tpu.memory_space<vmem>>, vector<16x1xi32>
    %8 = tpu.iota {dimensions = array<i32: 1>} : vector<16x16xi32>
    %9 = vector.broadcast %7 : vector<16x1xi32> to vector<16x16xi32>
    %10 = arith.cmpi eq, %8, %9 : vector<16x16xi32>
    %11 = tpu.iota {dimensions = array<i32: 0>} : vector<16x1xi32>
    %12 = vector.broadcast %5 : i32 to vector<16x1xi32>
    %13 = arith.addi %12, %11 : vector<16x1xi32>
    %c20_i32 = arith.constant 20 : i32
    %14 = vector.broadcast %c20_i32 : i32 to vector<16x1xi32>
    %15 = arith.cmpi slt, %13, %14 : vector<16x1xi32>
    %16 = vector.broadcast %15 : vector<16x1xi1> to vector<16x16xi1>
    %17 = arith.andi %10, %16 : vector<16x16xi1>
    %cst = arith.constant 0.000000e+00 : f32
    %18 = vector.broadcast %cst : f32 to vector<16x16xf32>
    %19 = arith.select %17, %6, %18 : vector<16x16xi1>, vector<16x16xf32>
    %cst_4 = arith.constant dense<0.000000e+00> : vector<16xf32>
    %20 = vector.multi_reduction <add>, %19, %cst_4 [1] : vector<16x16xf32> to vector<16xf32>
    %21 = vector.shape_cast %20 : vector<16xf32> to vector<16x1xf32>
    %cst_5 = arith.constant dense<0.000000e+00> : vector<1xf32>
    %22 = vector.multi_reduction <add>, %21, %cst_5 [0] : vector<16x1xf32> to vector<1xf32>
    %23 = vector.shape_cast %22 : vector<1xf32> to vector<1x1xf32>
    %c0_6 = arith.constant 0 : index
    %c0_7 = arith.constant 0 : index
    %c0_8 = arith.constant 0 : index
    %24 = vector.load %arg4[%c0_6, %c0_7, %c0_8] : memref<16x32x32xf32, #tpu.memory_space<vmem>>, vector<16x32x32xf32>
    %25 = arith.truncf %24 : vector<16x32x32xf32> to vector<16x32x32xbf16>
    "tpu.trace_start"() <{level = 10 : i32, message = "bij,bkj->bik"}> : () -> ()
    %cst_9 = arith.constant dense<0.000000e+00> : vector<16x32x32xf32>
    %26 = tpu.matmul %25, %25, %cst_9 {dimension_numbers = #tpu.dot_dimension_numbers<[2], [2], [1], [1], [0, 0, 0, 1, 1, 1], [0], [0]>} : vector<16x32x32xbf16>, vector<16x32x32xbf16>, vector<16x32x32xf32> -> vector<16x32x32xf32>
    "tpu.trace_stop"() : () -> ()
    %27 = tpu.iota {dimensions = array<i32: 0>} : vector<32x32xi32>
    %28 = tpu.iota {dimensions = array<i32: 1>} : vector<32x32xi32>
    %29 = arith.cmpi eq, %27, %28 : vector<32x32xi32>
    %30 = arith.extui %29 : vector<32x32xi1> to vector<32x32xi32>
    %31 = arith.sitofp %30 : vector<32x32xi32> to vector<32x32xf32>
    %32 = vector.shape_cast %31 : vector<32x32xf32> to vector<1x32x32xf32>
    %33 = vector.broadcast %32 : vector<1x32x32xf32> to vector<16x32x32xf32>
    %34 = arith.subf %26, %33 : vector<16x32x32xf32>
    %35 = arith.mulf %34, %34 : vector<16x32x32xf32>
    %cst_10 = arith.constant dense<0.000000e+00> : vector<16x32xf32>
    %36 = vector.multi_reduction <add>, %35, %cst_10 [2] : vector<16x32x32xf32> to vector<16x32xf32>
    %cst_11 = arith.constant dense<0.000000e+00> : vector<16xf32>
    %37 = vector.multi_reduction <add>, %36, %cst_11 [1] : vector<16x32xf32> to vector<16xf32>
    %38 = vector.shape_cast %37 : vector<16xf32> to vector<16x1xf32>
    %cst_12 = arith.constant 0.000000e+00 : f32
    %39 = vector.broadcast %cst_12 : f32 to vector<16x1xf32>
    %40 = arith.select %15, %38, %39 : vector<16x1xi1>, vector<16x1xf32>
    %41 = math.sqrt %40 : vector<16x1xf32>
    %cst_13 = arith.constant dense<0.000000e+00> : vector<1xf32>
    %42 = vector.multi_reduction <add>, %41, %cst_13 [0] : vector<16x1xf32> to vector<1xf32>
    %43 = vector.shape_cast %42 : vector<1xf32> to vector<1x1xf32>
    %c0_14 = arith.constant 0 : index
    %c0_15 = arith.constant 0 : index
    %c0_16 = arith.constant 0 : index
    %44 = vector.load %arg5[%c0_14, %c0_15, %c0_16] : memref<1x1x1xf32, #tpu.memory_space<vmem>>, vector<1x1x1xf32>
    %45 = vector.shape_cast %44 : vector<1x1x1xf32> to vector<1x1xf32>
    %cst_17 = arith.constant 5.000000e-05 : f32
    %46 = vector.broadcast %cst_17 : f32 to vector<1x1xf32>
    %47 = arith.mulf %46, %43 : vector<1x1xf32>
    %cst_18 = arith.constant 5.000000e-02 : f32
    %48 = vector.broadcast %cst_18 : f32 to vector<1x1xf32>
    %49 = arith.mulf %48, %23 : vector<1x1xf32>
    %50 = arith.subf %47, %49 : vector<1x1xf32>
    %51 = arith.addf %45, %50 : vector<1x1xf32>
    %c0_19 = arith.constant 0 : index
    %c0_20 = arith.constant 0 : index
    %c0_21 = arith.constant 0 : index
    %52 = vector.load %arg5[%c0_19, %c0_20, %c0_21] : memref<1x1x1xf32, #tpu.memory_space<vmem>>, vector<1x1x1xf32>
    %53 = vector.shape_cast %52 : vector<1x1x1xf32> to vector<1x1xf32>
    %54 = vector.shape_cast %51 : vector<1x1xf32> to vector<1x1x1xf32>
    tpu.vector_store %arg5[%c0_19, %c0_20, %c0_21], %54 {strides = array<i32>} : memref<1x1x1xf32, #tpu.memory_space<vmem>>, vector<1x1x1xf32>,
    return
  }
  func.func @transform_0(%arg0: i32, %arg1: i32) -> (i32, i32) {
    %c1_i32 = arith.constant 1 : i32
    %0 = arith.muli %arg0, %c1_i32 : i32
    %1 = arith.addi %0, %arg1 : i32
    %c0_i32 = arith.constant 0 : i32
    %c0_i32_0 = arith.constant 0 : i32
    return %1, %c0_i32 : i32, i32
  }
  func.func @transform_1(%arg0: i32, %arg1: i32) -> (i32, i32) {
    %c1_i32 = arith.constant 1 : i32
    %0 = arith.muli %arg0, %c1_i32 : i32
    %1 = arith.addi %0, %arg1 : i32
    %c0_i32 = arith.constant 0 : i32
    %c0_i32_0 = arith.constant 0 : i32
    return %1, %c0_i32 : i32, i32
  }
  func.func @transform_2(%arg0: i32, %arg1: i32) -> (i32, i32, i32) {
    %c1_i32 = arith.constant 1 : i32
    %0 = arith.muli %arg0, %c1_i32 : i32
    %1 = arith.addi %0, %arg1 : i32
    %c0_i32 = arith.constant 0 : i32
    %c0_i32_0 = arith.constant 0 : i32
    %c0_i32_1 = arith.constant 0 : i32
    return %1, %c0_i32, %c0_i32_0 : i32, i32, i32
  }
  func.func @transform_3(%arg0: i32, %arg1: i32) -> (i32, i32, i32) {
    %c0_i32 = arith.constant 0 : i32
    %c0_i32_0 = arith.constant 0 : i32
    %c0_i32_1 = arith.constant 0 : i32
    return %arg0, %c0_i32, %c0_i32_0 : i32, i32, i32
  }
}

</mosaic_0001>

<bundles_post_ra>
// kernel: tpu_custom_call.1
= control target key start
LH: loop header
LB: loop body
LE: loop exit
PB: predicated region body
PF: predicated region fallthrough
CT: control target
= control target key end

     0   :  { %8 = vsyncpa [#allocation3], 0  ;;  %s3298_s0 = inlined_call_operand.vmem [shape: f32[20,16], index: 0, kind: input, shape index: {}]   ;;  %s3299_s1 = inlined_call_operand.vmem [shape: s32[20,1], index: 1, kind: input, shape index: {}]   ;;  %s3300_s2 = inlined_call_operand.hbm [shape: f32[20,32,32], index: 2, kind: input, shape index: {}]   ;;  %s3301_s3 = inlined_call_operand.vmem [shape: f32[2,1,1], index: 3, kind: output, shape index: {}]  }
   0x1   :  { %10 = vsyncpa [#allocation3 + $0x1], 0  ;;  %s2657_s12 = smov 0   ;;  %s2659_s13 = smov 0  }
   0x2   :  { %s2661_s14 = smov 0   ;;  %s2663_s15 = smov 0  }
   0x3   :  { %s2665_s16 = smov 0   ;;  %s2667_s17 = smov 0  }
   0x4 LB: > { %s2205_s18 = sadd.s32 4294967295, %s2630_s17   ;;  %s28_s19 = sadd.s32 1, %s2626_s16  ;;  %s2630_s17 = sphi %s2667_s17, %s16_s17   ;;  %s2626_s16 = sphi %s2665_s16, %s3307_s16   ;;  %s2622_s15 = sphi %s2663_s15, %s3306_s15   ;;  %s2618_s14 = sphi %s2661_s14, %s3305_s14   ;;  %s2614_s13 = sphi %s2659_s13, %s3304_s13   ;;  %s2610_s12 = sphi %s2657_s12, %s3303_s12  }
   0x5   : > { %p30_p0 = scmp.ge.s32.totalorder %s28_s19, 2  ;;  %s93_s20 = sadd.s32 1, %s2618_s14 }
   0x6   : > { %p100_p1 = scmp.ne.s32.totalorder %s2618_s14, %s2614_s13  ;;  %p101_p2 = scmp.eq.s32.totalorder %s2630_s17, 0 }
   0x7   : > { %s3309_s19 = smov (%p30_p0, %s28_s19), 0  ;;  %p106_p4 = scmp.ne.s32.totalorder %s2614_s13, %s2610_s12 }
   0x8   : > { %p102_p3 = por %p101_p2, %p100_p1  ;;  %s90_s21 = ssub.s32 %s2626_s16, %s3309_s19 }
   0x9   : > { %p107_p5 = scmp.eq.s32.totalorder %s2205_s18, 0  ;;  %p91_p6 = scmp.eq.s32.totalorder %s90_s21, 0 }
   0xa   : > { %p2208_p8 = scmp.ge.s32.totalorder %s2630_s17, 2 }
   0xb   : > { %p2696_p7 = por %p107_p5, %p106_p4 }
   0xc   : > { %s2701_s23 = scalar_select %p91_p6, %s2618_s14, %s93_s20  }
   0xd   : > { %152 = sbr.rel (%p2208_p8) target bundleno = 55 (0x37), region = 16 }
  0x14   : > { %193 = sbr.rel (!%p102_p3) target bundleno = 55 (0x37), region = 28  ;;  %s194_s24 = sand.u32 (%p102_p3), 1, %s2618_s14  }
  0x15   : > { %s2210_s25 = sshll.u32 (%p102_p3), %s2626_s16, 4  ;;  %s2209_s26 = sshll.u32 (%p102_p3), %s194_s24, 9 }
  0x16   : > { %s201_s27 = ssub.s32 (%p102_p3), 20, %s2210_s25  ;;  %s2709_s30 = scalar_lea.sflag (%p102_p3), [#allocation3], %s194_s24 }
  0x17   : > { %p202_p9 = scmp.lt.s32.totalorder (%p102_p3), %s201_s27, 16  ;;  %s198_s4 = scalar_lea.vmem (%p102_p3), [#allocation2], %s2209_s26 }
  0x1b   : > { %s3311_s27 = smov (!%p202_p9, %s201_s27), 16 }
  0x1c   : > { %s2706_s28 = sshll.u32 %s3311_s27, 9 }
  0x1d   : > { %s207_s29 = ssub.s32 8192, %s2706_s28 }
  0x1e   : > { %208 = vsyncadd %s2709_s30, %s207_s29  ;;  %p2213_p10 = scmp.ne.s32.totalorder %s2706_s28, 0  ;;  %s2266_s5 = sshll.u32 %s2626_s16, 13 }
  0x1f   : > { %s2717_s8 = scalar_lea.hbm %s3300_s2, %s2266_s5  ;;  %s215_s9 = sshll.u32 %s198_s4, 4  ;;  %s2719_s9 = int_to_ptr.vmem [resolvable:$true] %s215_s9 }
  0x20   : > { %s2552_s10 = scalar_lea.hbm %s2717_s8, %s2706_s28  ;;  %s2556_s18 = scalar_lea.hbm %s3300_s2, 10240 }
  0x21   : > { %p2553_p11 = scmp.ne.s32.totalorder %s2717_s8, %s2552_s10  ;;  %p2557_p0 = scmp.lt.u32.totalorder %s2717_s8, %s3300_s2 }
  0x22   : > { %p2558_p1 = scmp.lt.u32.totalorder %s2556_s18, %s2552_s10  ;;  %p2560_p3 = scmp.lt.u32.totalorder %s2552_s10, %s2717_s8 }
  0x23   : > { %p2554_p12 = pnand %p2553_p11, %p2213_p10 }
  0x24   : > { %p2559_p2 = por %p2558_p1, %p2557_p0 }
  0x25   : > { %p2555_p13 = pneg %p2554_p12 }
  0x26   : > { %p2561_p4 = por %p2560_p3, %p2559_p2 }
  0x28   : > { %p2562_p5 = pnand %p2561_p4, %p2555_p13 }
  0x2a   : > { %2565 = shalt.err (!%p2562_p5)
}
  0x2b   : > { %s2566_s24 = scalar_lea.vmem %s2719_s9, %s2706_s28  ;;  %s2632_s25 = smov [#allocation2]  }
  0x2c   : > { %p2567_p6 = scmp.ne.s32.totalorder %s2719_s9, %s2566_s24  ;;  %s2570_s26 = sshll.u32 %s2632_s25, 4  ;;  %s2571_s26 = int_to_ptr.vmem [resolvable:$false] %s2570_s26 }
  0x2d   : > { %s2572_s27 = scalar_lea.vmem %s2571_s26, 16384  ;;  %p2573_p11 = scmp.lt.s32.totalorder %s2719_s9, %s2571_s26 }
  0x2e   : > { %p2568_p8 = pnand %p2567_p6, %p2213_p10  ;;  %p2574_p12 = scmp.lt.s32.totalorder %s2572_s27, %s2566_s24 }
  0x30   : > { %p2569_p9 = pneg %p2568_p8  ;;  %p2575_p0 = por %p2574_p12, %p2573_p11 }
  0x32   : > { %p2576_p1 = pnand %p2575_p0, %p2569_p9 }
  0x34   : > { %2579 = shalt.err (!%p2576_p1)
}
  0x35   : > { %s2633_s29 = smov 128   ;;  %s2634_s4 = smov 8  }
  0x36   : > { %221 = dma.hbm_to_vmem [thread:$0]  (%p2213_p10), %s2717_s8, %s2706_s28, %s2719_s9, %s2709_s30, %s2633_s29, %s2633_s29, %s2634_s4  }
  0x37 PF: > { %p2219_p13 = scmp.ge.s32.totalorder %s2630_s17, 1  ;;  %p223_p2 = scmp.lt.s32.totalorder %s2630_s17, 3 }
  0x39   : > { %p224_p3 = pnand %p2219_p13, %p223_p2 }
  0x3a   : > { %s229_s5 = sand.u32 (!%p224_p3), 1, %s2614_s13  }
  0x3b   : > { %227 = sbr.rel (%p224_p3) target bundleno = 760 (0x2f8), region = 32  ;;  %s2220_s6 = sshll.u32 (!%p224_p3), %s229_s5, 9 }
  0x3c   : > { %s230_s7 = scalar_lea.sflag (!%p224_p3), [#allocation3], %s229_s5  ;;  %s2749_s10 = scalar_lea.vmem (!%p224_p3), [#allocation2], %s2220_s6 }
  0x42   : > { %2605 = dma.done.wait (%p2696_p7), %s230_s7, 8192  }
  0x43   : > { %2607 = vsyncadd (%p2696_p7), %s230_s7, 4294959104  ;;  %v369_v0 = vld [vmem:[%s2749_s10] sm:$0xff]  ;;  %v370_v1 = vld [vmem:[%s2749_s10 + $0x8] sm:$0xff]  ;;  %vm465_vm0 = vcmask 261120   ;;  %s2221_s22 = sshll.u32 %s2622_s15, 1  ;;  %vm1753_vm5 = vcmask 130112  }
  0x44   : > { %v373_v2 = vld [vmem:[%s2749_s10 + $0x20] sm:$0xff]  ;;  %v433_v3 = vpack.c.bf16 %v370_v1, %v369_v0  ;;  %v374_v4 = vld [vmem:[%s2749_s10 + $0x28] sm:$0xff]  ;;  %v371_v5 = vld [vmem:[%s2749_s10 + $0x10] sm:$0xff]  ;;  %p280_p7 = scmp.lt.s32.totalorder %s2221_s22, 2  ;;  %vm1760_vm6 = vcmask 195712   ;;  %vm1767_vm7 = vcmask 261312  }
  0x45   : > { %v372_v6 = vld [vmem:[%s2749_s10 + $0x18] sm:$0xff]  ;;  %v435_v7 = vpack.c.bf16 %v374_v4, %v373_v2  ;;  %v375_v9 = vld [vmem:[%s2749_s10 + $0x30] sm:$0xff]  ;;  %v377_v14 = vld [vmem:[%s2749_s10 + $0x40] sm:$0xff]  ;;  %vm2054_vm8 = vcmask 1041409   ;;  %vm2056_vm9 = vcmask 1042434   ;;  %vm2058_vm10 = vcmask 1043459  }
  0x46   : > { %v434_v8 = vpack.c.bf16 %v372_v6, %v371_v5  ;;  %v376_v10 = vld [vmem:[%s2749_s10 + $0x38] sm:$0xff]  ;;  %2461 = vmatprep.subr.msk.bf16.mxu0 %vm465_vm0, %v433_v3  ;;  %v467_v11 = vsel %vm465_vm0, %v433_v3, 0  ;;  %2337 = vmatprep.mubr.msk.bf16.mxu0 %vm465_vm0, %v433_v3  ;;  %v378_v15 = vld [vmem:[%s2749_s10 + $0x48] sm:$0xff]  ;;  %v381_v16 = vld [vmem:[%s2749_s10 + $0x60] sm:$0xff]  ;;  %s3313_s22 = smov (!%p280_p7, %s2221_s22), 2  ;;  %vm2060_vm11 = vcmask 1044484  }
  0x47   : > { %v436_v12 = vpack.c.bf16 %v376_v10, %v375_v9  ;;  %2463 = vmatprep.subr.msk.bf16.mxu1 %vm465_vm0, %v435_v7  ;;  %2334 = vmatpush3.bf16.xpose.msra.mxu0 %v467_v11  ;;  %v522_v13 = vsel %vm465_vm0, %v435_v7, 0  ;;  %v382_v17 = vld [vmem:[%s2749_s10 + $0x68] sm:$0xff]  ;;  %v437_v19 = vpack.c.bf16 %v378_v15, %v377_v14  ;;  %v379_v22 = vld [vmem:[%s2749_s10 + $0x50] sm:$0xff]  ;;  %v380_v23 = vld [vmem:[%s2749_s10 + $0x58] sm:$0xff]  ;;  %s2222_s28 = sshll.u32 %s3313_s22, 3  ;;  %vm2062_vm12 = vcmask 1045509  }
  0x48   : > { %2342 = vmatpush3.bf16.xpose.msra.mxu1 %v522_v13  ;;  %2462 = vmatprep.subr.msk.bf16.mxu0 %vm465_vm0, %v434_v8  ;;  %v470_v18 = vsel %vm465_vm0, %v434_v8, 0  ;;  %v439_v21 = vpack.c.bf16 %v382_v17, %v381_v16  ;;  %v383_v24 = vld [vmem:[%s2749_s10 + $0x70] sm:$0xff]  ;;  %v384_v25 = vld [vmem:[%s2749_s10 + $0x78] sm:$0xff]  ;;  %v438_v27 = vpack.c.bf16 %v380_v23, %v379_v22  ;;  %v385_v30 = vld [vmem:[%s2749_s10 + $0x80] sm:$0xff]  ;;  %s299_s9 = scalar_lea.vmem %s3299_s1, %s2222_s28  ;;  %vm2064_vm13 = vcmask 1046534   ;;  %s2225_s11 = sshll.u32 %s2622_s15, 4 }
  0x49   : > { %2464 = vmatprep.subr.msk.bf16.mxu1 %vm465_vm0, %v436_v12  ;;  %2345 = vmatprep.mubr.msk.bf16.mxu1 %vm465_vm0, %v435_v7  ;;  %v525_v20 = vsel %vm465_vm0, %v436_v12, 0  ;;  %v577_v26 = vsel %vm465_vm0, %v437_v19, 0  ;;  %v440_v29 = vpack.c.bf16 %v384_v25, %v383_v24  ;;  %v386_v31 = vld [vmem:[%s2749_s10 + $0x88] sm:$0xff]  ;;  %v389_v32 = vld [vmem:[%s2749_s10 + $0xa0] sm:$0xff]  ;;  %v387_v38 = vld [vmem:[%s2749_s10 + $0x90] sm:$0xff]  ;;  %vm2066_vm14 = vcmask 1047559   ;;  %s283_s20 = scalar_lea.vmem %s3298_s0, %s2222_s28 }
  0x4a   : > { %v632_v28 = vsel %vm465_vm0, %v439_v21, 0  ;;  %v390_v33 = vld [vmem:[%s2749_s10 + $0xa8] sm:$0xff]  ;;  %v580_v34 = vsel %vm465_vm0, %v438_v27, 0  ;;  %v441_v35 = vpack.c.bf16 %v386_v31, %v385_v30  ;;  %v388_v39 = vld [vmem:[%s2749_s10 + $0x98] sm:$0xff]  ;;  %v391_v40 = vld [vmem:[%s2749_s10 + $0xb0] sm:$0xff]  ;;  %p313_p10 = scmp.lt.s32.totalorder %s2622_s15, 1 }
  0x4b   : > { %v635_v36 = vsel %vm465_vm0, %v440_v29, 0  ;;  %v443_v37 = vpack.c.bf16 %v390_v33, %v389_v32  ;;  %v392_v41 = vld [vmem:[%s2749_s10 + $0xb8] sm:$0xff]  ;;  %v442_v43 = vpack.c.bf16 %v388_v39, %v387_v38  ;;  %v393_v46 = vld [vmem:[%s2749_s10 + $0xc0] sm:$0xff]  ;;  %v394_v47 = vld [vmem:[%s2749_s10 + $0xc8] sm:$0xff] }
  0x4c   : > { %v687_v42 = vsel %vm465_vm0, %v441_v35, 0  ;;  %v444_v45 = vpack.c.bf16 %v392_v41, %v391_v40  ;;  %v397_v48 = vld [vmem:[%s2749_s10 + $0xe0] sm:$0xff]  ;;  %v398_v49 = vld [vmem:[%s2749_s10 + $0xe8] sm:$0xff]  ;;  %v445_v51 = vpack.c.bf16 %v394_v47, %v393_v46  ;;  %v395_v54 = vld [vmem:[%s2749_s10 + $0xd0] sm:$0xff]  ;;  %s3315_s15 = smov (!%p313_p10, %s2622_s15), 1 }
  0x4d   : > { %v742_v44 = vsel %vm465_vm0, %v443_v37, 0  ;;  %v690_v50 = vsel %vm465_vm0, %v442_v43, 0  ;;  %v447_v53 = vpack.c.bf16 %v398_v49, %v397_v48  ;;  %v396_v55 = vld [vmem:[%s2749_s10 + $0xd8] sm:$0xff]  ;;  %v399_v56 = vld [vmem:[%s2749_s10 + $0xf0] sm:$0xff]  ;;  %v401_v62 = vld [vmem:[%s2749_s10 + $0x100] sm:$0xff]  ;;  %s3270_s25 = scalar_lea.vmem %s3301_s3, %s3315_s15 }
  0x4e   : > { %v745_v52 = vsel %vm465_vm0, %v444_v45, 0  ;;  %v400_v57 = vld [vmem:[%s2749_s10 + $0xf8] sm:$0xff]  ;;  %v797_v58 = vsel %vm465_vm0, %v445_v51, 0  ;;  %v446_v59 = vpack.c.bf16 %v396_v55, %v395_v54  ;;  %v402_v63 = vld [vmem:[%s2749_s10 + $0x108] sm:$0xff]  ;;  %v405_v0 = vld [vmem:[%s2749_s10 + $0x120] sm:$0xff] }
  0x4f   : > { %2336 = vmatpush3.bf16.xpose.msra.mxu0 %v470_v18  ;;  %v852_v60 = vsel %vm465_vm0, %v447_v53, 0  ;;  %v448_v61 = vpack.c.bf16 %v400_v57, %v399_v56  ;;  %v406_v1 = vld [vmem:[%s2749_s10 + $0x128] sm:$0xff]  ;;  %v449_v3 = vpack.c.bf16 %v402_v63, %v401_v62  ;;  %v403_v6 = vld [vmem:[%s2749_s10 + $0x110] sm:$0xff]  ;;  %v404_v7 = vld [vmem:[%s2749_s10 + $0x118] sm:$0xff] }
  0x50   : > { %2344 = vmatpush3.bf16.xpose.msra.mxu1 %v525_v20  ;;  %2465 = vmatprep.subr.msk.bf16.mxu0 %vm465_vm0, %v437_v19  ;;  %v800_v2 = vsel %vm465_vm0, %v446_v59, 0  ;;  %v451_v5 = vpack.c.bf16 %v406_v1, %v405_v0  ;;  %v408_v9 = vld [vmem:[%s2749_s10 + $0x138] sm:$0xff]  ;;  %v450_v11 = vpack.c.bf16 %v404_v7, %v403_v6  ;;  %v409_v14 = vld [vmem:[%s2749_s10 + $0x140] sm:$0xff]  ;;  %v410_v15 = vld [vmem:[%s2749_s10 + $0x148] sm:$0xff]  ;;  %v329_v0 = vlaneseq }
  0x51   : > { %2467 = vmatprep.subr.msk.bf16.mxu1 %vm465_vm0, %v439_v21  ;;  %v855_v4 = vsel %vm465_vm0, %v448_v61, 0  ;;  %v907_v10 = vsel %vm465_vm0, %v449_v3, 0  ;;  %v413_v16 = vld [vmem:[%s2749_s10 + $0x160] sm:$0xff]  ;;  %v414_v17 = vld [vmem:[%s2749_s10 + $0x168] sm:$0xff]  ;;  %v411_v22 = vld [vmem:[%s2749_s10 + $0x150] sm:$0xff] }
  0x52   : > { %v910_v18 = vsel %vm465_vm0, %v450_v11, 0  ;;  %v412_v23 = vld [vmem:[%s2749_s10 + $0x158] sm:$0xff]  ;;  %v415_v24 = vld [vmem:[%s2749_s10 + $0x170] sm:$0xff]  ;;  %v417_v30 = vld [vmem:[%s2749_s10 + $0x180] sm:$0xff]  ;;  %v2915_v1 = vshrl.u32 %v329_v0, 7 }
  0x53   : > { %v416_v25 = vld [vmem:[%s2749_s10 + $0x178] sm:$0xff]  ;;  %v418_v31 = vld [vmem:[%s2749_s10 + $0x188] sm:$0xff]  ;;  %v421_v32 = vld [vmem:[%s2749_s10 + $0x1a0] sm:$0xff] }
  0x54   : > { %v422_v33 = vld [vmem:[%s2749_s10 + $0x1a8] sm:$0xff]  ;;  %v419_v38 = vld [vmem:[%s2749_s10 + $0x190] sm:$0xff]  ;;  %v420_v39 = vld [vmem:[%s2749_s10 + $0x198] sm:$0xff] }
  0x55   : > { %v423_v40 = vld [vmem:[%s2749_s10 + $0x1b0] sm:$0xff]  ;;  %v424_v41 = vld [vmem:[%s2749_s10 + $0x1b8] sm:$0xff]  ;;  %v425_v46 = vld [vmem:[%s2749_s10 + $0x1c0] sm:$0xff] }
  0x56   : > { %2338 = vmatmul.mubr.msk.bf16.vlgmr.msra.gmra.mrb[0].mxu0 %vm465_vm0, %v434_v8  ;;  %v407_v8 = vld [vmem:[%s2749_s10 + $0x130] sm:$0xff]  ;;  %v426_v47 = vld [vmem:[%s2749_s10 + $0x1c8] sm:$0xff]  ;;  %v429_v48 = vld [vmem:[%s2749_s10 + $0x1e0] sm:$0xff] }
  0x57   : > { %2346 = vmatmul.mubr.msk.bf16.vlgmr.msra.gmra.mrb[0].mxu1 %vm465_vm0, %v436_v12  ;;  %2350 = vmatpush3.bf16.xpose.msra.mxu0 %v577_v26  ;;  %v962_v12 = vsel %vm465_vm0, %v451_v5, 0  ;;  %v452_v13 = vpack.c.bf16 %v408_v9, %v407_v8  ;;  %v430_v49 = vld [vmem:[%s2749_s10 + $0x1e8] sm:$0xff]  ;;  %v427_v54 = vld [vmem:[%s2749_s10 + $0x1d0] sm:$0xff]  ;;  %v428_v55 = vld [vmem:[%s2749_s10 + $0x1d8] sm:$0xff]  ;;  %v2932_v8 = vadd.s32 8, %v2915_v1 }
  0x58   : > { %2358 = vmatpush3.bf16.xpose.msra.mxu1 %v632_v28  ;;  %2466 = vmatprep.subr.msk.bf16.mxu0 %vm465_vm0, %v438_v27  ;;  %v431_v56 = vld [vmem:[%s2749_s10 + $0x1f0] sm:$0xff]  ;;  %v432_v57 = vld [vmem:[%s2749_s10 + $0x1f8] sm:$0xff] }
  0x59   : > { %2468 = vmatprep.subr.msk.bf16.mxu1 %vm465_vm0, %v440_v29  ;;  %2353 = vmatprep.mubr.msk.bf16.mxu0 %vm465_vm0, %v437_v19  ;;  %v453_v19 = vpack.c.bf16 %v410_v15, %v409_v14  ;;  %v965_v20 = vsel %vm465_vm0, %v452_v13, 0 }
  0x5a   : > { %2361 = vmatprep.mubr.msk.bf16.mxu1 %vm465_vm0, %v439_v21  ;;  %v455_v21 = vpack.c.bf16 %v414_v17, %v413_v16 }
  0x5b   : > { %v1017_v26 = vsel %vm465_vm0, %v453_v19, 0 }
  0x5c   : > { %v1072_v28 = vsel %vm465_vm0, %v455_v21, 0 }
  0x5f   : > { %2352 = vmatpush3.bf16.xpose.msra.mxu0 %v580_v34 }
  0x60   : > { %2360 = vmatpush3.bf16.xpose.msra.mxu1 %v635_v36  ;;  %2469 = vmatprep.subr.msk.bf16.mxu0 %vm465_vm0, %v441_v35 }
  0x61   : > { %2471 = vmatprep.subr.msk.bf16.mxu1 %vm465_vm0, %v443_v37 }
  0x66   : > { %2354 = vmatmul.mubr.msk.bf16.vlgmr.msra.gmra.mrb[4].mxu0 %vm465_vm0, %v438_v27  ;;  %v454_v27 = vpack.c.bf16 %v412_v23, %v411_v22 }
  0x67   : > { %2362 = vmatmul.mubr.msk.bf16.vlgmr.msra.gmra.mrb[4].mxu1 %vm465_vm0, %v440_v29  ;;  %2366 = vmatpush3.bf16.xpose.msra.mxu0 %v687_v42  ;;  %v456_v29 = vpack.c.bf16 %v416_v25, %v415_v24 }
  0x68   : > { %2374 = vmatpush3.bf16.xpose.msra.mxu1 %v742_v44  ;;  %2470 = vmatprep.subr.msk.bf16.mxu0 %vm465_vm0, %v442_v43  ;;  %v1020_v34 = vsel %vm465_vm0, %v454_v27, 0 }
  0x69   : > { %2472 = vmatprep.subr.msk.bf16.mxu1 %vm465_vm0, %v444_v45  ;;  %2369 = vmatprep.mubr.msk.bf16.mxu0 %vm465_vm0, %v441_v35  ;;  %v457_v35 = vpack.c.bf16 %v418_v31, %v417_v30  ;;  %v1075_v36 = vsel %vm465_vm0, %v456_v29, 0 }
  0x6a   : > { %2377 = vmatprep.mubr.msk.bf16.mxu1 %vm465_vm0, %v443_v37  ;;  %v459_v37 = vpack.c.bf16 %v422_v33, %v421_v32 }
  0x6b   : > { %v1127_v42 = vsel %vm465_vm0, %v457_v35, 0 }
  0x6c   : > { %v1182_v44 = vsel %vm465_vm0, %v459_v37, 0 }
  0x6f   : > { %2368 = vmatpush3.bf16.xpose.msra.mxu0 %v690_v50 }
  0x70   : > { %2376 = vmatpush3.bf16.xpose.msra.mxu1 %v745_v52  ;;  %2473 = vmatprep.subr.msk.bf16.mxu0 %vm465_vm0, %v445_v51 }
  0x71   : > { %2475 = vmatprep.subr.msk.bf16.mxu1 %vm465_vm0, %v447_v53 }
  0x76   : > { %2370 = vmatmul.mubr.msk.bf16.vlgmr.msra.gmra.mrb[8].mxu0 %vm465_vm0, %v442_v43  ;;  %v458_v43 = vpack.c.bf16 %v420_v39, %v419_v38 }
  0x77   : > { %2378 = vmatmul.mubr.msk.bf16.vlgmr.msra.gmra.mrb[8].mxu1 %vm465_vm0, %v444_v45  ;;  %2382 = vmatpush3.bf16.xpose.msra.mxu0 %v797_v58  ;;  %v460_v45 = vpack.c.bf16 %v424_v41, %v423_v40 }
  0x78   : > { %2390 = vmatpush3.bf16.xpose.msra.mxu1 %v852_v60  ;;  %2474 = vmatprep.subr.msk.bf16.mxu0 %vm465_vm0, %v446_v59  ;;  %v1130_v50 = vsel %vm465_vm0, %v458_v43, 0 }
  0x79   : > { %2476 = vmatprep.subr.msk.bf16.mxu1 %vm465_vm0, %v448_v61  ;;  %2385 = vmatprep.mubr.msk.bf16.mxu0 %vm465_vm0, %v445_v51  ;;  %v461_v51 = vpack.c.bf16 %v426_v47, %v425_v46  ;;  %v1185_v52 = vsel %vm465_vm0, %v460_v45, 0 }
  0x7a   : > { %2393 = vmatprep.mubr.msk.bf16.mxu1 %vm465_vm0, %v447_v53  ;;  %v463_v53 = vpack.c.bf16 %v430_v49, %v429_v48 }
  0x7b   : > { %v1237_v58 = vsel %vm465_vm0, %v461_v51, 0 }
  0x7c   : > { %v1292_v60 = vsel %vm465_vm0, %v463_v53, 0 }
  0x7f   : > { %2384 = vmatpush3.bf16.xpose.msra.mxu0 %v800_v2  ;;  %v2917_v2 = vand.u32 127, %v329_v0 }
  0x80   : > { %2392 = vmatpush3.bf16.xpose.msra.mxu1 %v855_v4  ;;  %2477 = vmatprep.subr.msk.bf16.mxu0 %vm465_vm0, %v449_v3  ;;  %v1347_v4 = vadd.s32 24, %v2915_v1 }
  0x81   : > { %2479 = vmatprep.subr.msk.bf16.mxu1 %vm465_vm0, %v451_v5  ;;  %vm1348_vm2 = vcmp.eq.s32.totalorder %v2915_v1, %v2917_v2  ;;  %vm1349_vm4 = vcmp.eq.s32.totalorder %v2932_v8, %v2917_v2 }
  0x82   : > { %vm1351_vm3 = vcmp.eq.s32.totalorder %v1347_v4, %v2917_v2  ;;  %v2636_v4 = vmov 0  }
  0x83   : > { %2546 = vset.pattern.permute.xlu0 %v2636_v4  ;;  %2547 = vset.pattern.permute.xlu1 %v2636_v4 }
  0x86   : > { %2386 = vmatmul.mubr.msk.bf16.vlgmr.msra.gmra.mrb[12].mxu0 %vm465_vm0, %v446_v59  ;;  %v462_v59 = vpack.c.bf16 %v428_v55, %v427_v54 }
  0x87   : > { %2394 = vmatmul.mubr.msk.bf16.vlgmr.msra.gmra.mrb[12].mxu1 %vm465_vm0, %v448_v61  ;;  %2398 = vmatpush3.bf16.xpose.msra.mxu0 %v907_v10  ;;  %v464_v61 = vpack.c.bf16 %v432_v57, %v431_v56 }
  0x88   : > { %2406 = vmatpush3.bf16.xpose.msra.mxu1 %v962_v12  ;;  %2478 = vmatprep.subr.msk.bf16.mxu0 %vm465_vm0, %v450_v11  ;;  %v1240_v62 = vsel %vm465_vm0, %v462_v59, 0 }
  0x89   : > { %2480 = vmatprep.subr.msk.bf16.mxu1 %vm465_vm0, %v452_v13  ;;  %2401 = vmatprep.mubr.msk.bf16.mxu0 %vm465_vm0, %v449_v3  ;;  %v1295_v63 = vsel %vm465_vm0, %v464_v61, 0  ;;  %v1346_v3 = vadd.s32 16, %v2915_v1 }
  0x8a   : > { %2409 = vmatprep.mubr.msk.bf16.mxu1 %vm465_vm0, %v451_v5  ;;  %v2635_v5 = vmov 0.0  }
  0x8b   : > { %vm1350_vm1 = vcmp.eq.s32.totalorder %v1346_v3, %v2917_v2  ;;  %v2928_v7 = vsel %vm1348_vm2, 1.0, %v2635_v5  ;;  %v2938_v17 = vsel %vm1351_vm3, 1.0, %v2635_v5  ;;  %vm355_vm3 = vcmask 130048  }
  0x8c   : > { %v2925_v6 = vsel %vm1350_vm1, 1.0, %v2635_v5 }
  0x8f   : > { %2400 = vmatpush3.bf16.xpose.msra.mxu0 %v910_v18 }
  0x90   : > { %2408 = vmatpush3.bf16.xpose.msra.mxu1 %v965_v20  ;;  %2481 = vmatprep.subr.msk.bf16.mxu0 %vm465_vm0, %v453_v19 }
  0x91   : > { %2483 = vmatprep.subr.msk.bf16.mxu1 %vm465_vm0, %v455_v21 }
  0x96   : > { %2402 = vmatmul.mubr.msk.bf16.vlgmr.msra.gmra.mrb[16].mxu0 %vm465_vm0, %v450_v11 }
  0x97   : > { %2410 = vmatmul.mubr.msk.bf16.vlgmr.msra.gmra.mrb[16].mxu1 %vm465_vm0, %v452_v13  ;;  %2414 = vmatpush3.bf16.xpose.msra.mxu0 %v1017_v26 }
  0x98   : > { %2422 = vmatpush3.bf16.xpose.msra.mxu1 %v1072_v28  ;;  %2482 = vmatprep.subr.msk.bf16.mxu0 %vm465_vm0, %v454_v27 }
  0x99   : > { %2484 = vmatprep.subr.msk.bf16.mxu1 %vm465_vm0, %v456_v29  ;;  %2417 = vmatprep.mubr.msk.bf16.mxu0 %vm465_vm0, %v453_v19 }
  0x9a   : > { %2425 = vmatprep.mubr.msk.bf16.mxu1 %vm465_vm0, %v455_v21 }
  0x9f   : > { %2416 = vmatpush3.bf16.xpose.msra.mxu0 %v1020_v34 }
  0xa0   : > { %2424 = vmatpush3.bf16.xpose.msra.mxu1 %v1075_v36  ;;  %2485 = vmatprep.subr.msk.bf16.mxu0 %vm465_vm0, %v457_v35 }
  0xa1   : > { %2487 = vmatprep.subr.msk.bf16.mxu1 %vm465_vm0, %v459_v37 }
  0xa6   : > { %2418 = vmatmul.mubr.msk.bf16.vlgmr.msra.gmra.mrb[20].mxu0 %vm465_vm0, %v454_v27 }
  0xa7   : > { %2426 = vmatmul.mubr.msk.bf16.vlgmr.msra.gmra.mrb[20].mxu1 %vm465_vm0, %v456_v29  ;;  %2430 = vmatpush3.bf16.xpose.msra.mxu0 %v1127_v42  ;;  %v2947_v29 = vsel %vm1349_vm4, 1.0, %v2635_v5 }
  0xa8   : > { %2438 = vmatpush3.bf16.xpose.msra.mxu1 %v1182_v44  ;;  %2486 = vmatprep.subr.msk.bf16.mxu0 %vm465_vm0, %v458_v43 }
  0xa9   : > { %2488 = vmatprep.subr.msk.bf16.mxu1 %vm465_vm0, %v460_v45  ;;  %2433 = vmatprep.mubr.msk.bf16.mxu0 %vm465_vm0, %v457_v35 }
  0xaa   : > { %2441 = vmatprep.mubr.msk.bf16.mxu1 %vm465_vm0, %v459_v37 }
  0xaf   : > { %2432 = vmatpush3.bf16.xpose.msra.mxu0 %v1130_v50 }
  0xb0   : > { %2440 = vmatpush3.bf16.xpose.msra.mxu1 %v1185_v52  ;;  %2489 = vmatprep.subr.msk.bf16.mxu0 %vm465_vm0, %v461_v51 }
  0xb1   : > { %2491 = vmatprep.subr.msk.bf16.mxu1 %vm465_vm0, %v463_v53 }
  0xb6   : > { %2434 = vmatmul.mubr.msk.bf16.vlgmr.msra.gmra.mrb[24].mxu0 %vm465_vm0, %v458_v43 }
  0xb7   : > { %2442 = vmatmul.mubr.msk.bf16.vlgmr.msra.gmra.mrb[24].mxu1 %vm465_vm0, %v460_v45  ;;  %2446 = vmatpush3.bf16.xpose.msra.mxu0 %v1237_v58 }
  0xb8   : > { %2454 = vmatpush3.bf16.xpose.msra.mxu1 %v1292_v60  ;;  %2490 = vmatprep.subr.msk.bf16.mxu0 %vm465_vm0, %v462_v59 }
  0xb9   : > { %2492 = vmatprep.subr.msk.bf16.mxu1 %vm465_vm0, %v464_v61  ;;  %2449 = vmatprep.mubr.msk.bf16.mxu0 %vm465_vm0, %v461_v51 }
  0xba   : > { %2457 = vmatprep.mubr.msk.bf16.mxu1 %vm465_vm0, %v463_v53 }
  0xbf   : > { %2448 = vmatpush3.bf16.xpose.msra.mxu0 %v1240_v62 }
  0xc0   : > { %2456 = vmatpush3.bf16.xpose.msra.mxu1 %v1295_v63 }
  0xc6   : > { %2450 = vmatmul.mubr.msk.bf16.vlgmr.msra.gmra.mrb[28].mxu0 %vm465_vm0, %v462_v59 }
  0xc7   : > { %2458 = vmatmul.mubr.msk.bf16.vlgmr.msra.gmra.mrb[28].mxu1 %vm465_vm0, %v464_v61 }
 0x129   : > { %v2339_v9 = vpop.f32.mrb[0].mxu0 }
 0x12a   : > { %v1362_v10 = vsub.f32 %v2339_v9, %v2925_v6  ;;  %v2347_v11 = vpop.f32.mrb[0].mxu1  ;;  %v506_v12 = vpop.f32.mrb[1].mxu0 }
 0x12b   : > { %v1366_v13 = vsub.f32 %v2347_v11, %v2925_v6  ;;  %v1360_v14 = vsub.f32 %v506_v12, %v2928_v7  ;;  %v561_v15 = vpop.f32.mrb[1].mxu1  ;;  %v2340_v16 = vpop.f32.mrb[2].mxu0 }
 0x12c   : > { %v1426_v18 = vmul.f32 %v1362_v10, %v1362_v10  ;;  %v1364_v19 = vsub.f32 %v561_v15, %v2928_v7  ;;  %v2348_v20 = vpop.f32.mrb[2].mxu1  ;;  %v509_v21 = vpop.f32.mrb[3].mxu0  ;;  %v1363_v25 = vsub.f32 %v2340_v16, %v2938_v17 }
 0x12d   : > { %v1430_v22 = vmul.f32 %v1366_v13, %v1366_v13  ;;  %v564_v23 = vpop.f32.mrb[3].mxu1  ;;  %v1424_v24 = vmul.f32 %v1360_v14, %v1360_v14  ;;  %v1367_v28 = vsub.f32 %v2348_v20, %v2938_v17  ;;  %v1361_v32 = vsub.f32 %v509_v21, %v2947_v29 }
 0x12e   : > { %v1494_v26 = vsel %vm465_vm0, %v1426_v18, 0.0  ;;  %v1428_v27 = vmul.f32 %v1364_v19, %v1364_v19  ;;  %v1427_v31 = vmul.f32 %v1363_v25, %v1363_v25  ;;  %v1365_v35 = vsub.f32 %v564_v23, %v2947_v29 }
 0x12f   : > { %v1506_v30 = vsel %vm465_vm0, %v1430_v22, 0.0  ;;  %1495 = vadd.xlane.f32.xlu0 %v1494_v26  ;;  %v1488_v33 = vsel %vm465_vm0, %v1424_v24, 0.0  ;;  %v1431_v34 = vmul.f32 %v1367_v28, %v1367_v28  ;;  %v1425_v37 = vmul.f32 %v1361_v32, %v1361_v32 }
 0x130   : > { %1507 = vadd.xlane.f32.xlu1 %v1506_v30  ;;  %v1500_v36 = vsel %vm465_vm0, %v1428_v27, 0.0  ;;  %v1497_v38 = vsel %vm465_vm0, %v1427_v31, 0.0  ;;  %v1429_v39 = vmul.f32 %v1365_v35, %v1365_v35 }
 0x131   : > { %v1509_v40 = vsel %vm465_vm0, %v1431_v34, 0.0  ;;  %v1491_v45 = vsel %vm465_vm0, %v1425_v37, 0.0 }
 0x132   : > { %v1503_v49 = vsel %vm465_vm0, %v1429_v39, 0.0 }
 0x133   : > { %1489 = vadd.xlane.f32.xlu0 %v1488_v33 }
 0x134   : > { %1501 = vadd.xlane.f32.xlu1 %v1500_v36 }
 0x137   : > { %1498 = vadd.xlane.f32.xlu0 %v1497_v38 }
 0x138   : > { %1510 = vadd.xlane.f32.xlu1 %v1509_v40 }
 0x139   : > { %v2355_v41 = vpop.f32.mrb[4].mxu0 }
 0x13a   : > { %v1370_v42 = vsub.f32 %v2355_v41, %v2925_v6  ;;  %v2363_v43 = vpop.f32.mrb[4].mxu1  ;;  %v616_v44 = vpop.f32.mrb[5].mxu0 }
 0x13b   : > { %v1374_v46 = vsub.f32 %v2363_v43, %v2925_v6  ;;  %v1368_v47 = vsub.f32 %v616_v44, %v2928_v7  ;;  %v671_v48 = vpop.f32.mrb[5].mxu1  ;;  %1492 = vadd.xlane.f32.xlu0 %v1491_v45  ;;  %v2356_v50 = vpop.f32.mrb[6].mxu0 }
 0x13c   : > { %v1434_v51 = vmul.f32 %v1370_v42, %v1370_v42  ;;  %v1372_v52 = vsub.f32 %v671_v48, %v2928_v7  ;;  %1504 = vadd.xlane.f32.xlu1 %v1503_v49  ;;  %v2364_v53 = vpop.f32.mrb[6].mxu1  ;;  %v619_v54 = vpop.f32.mrb[7].mxu0  ;;  %v1371_v58 = vsub.f32 %v2356_v50, %v2938_v17 }
 0x13d   : > { %v1438_v55 = vmul.f32 %v1374_v46, %v1374_v46  ;;  %v674_v56 = vpop.f32.mrb[7].mxu1  ;;  %v1432_v57 = vmul.f32 %v1368_v47, %v1368_v47  ;;  %v1369_v61 = vsub.f32 %v619_v54, %v2947_v29  ;;  %v1375_v63 = vsub.f32 %v2364_v53, %v2938_v17 }
 0x13e   : > { %v1518_v59 = vsel %vm465_vm0, %v1434_v51, 0.0  ;;  %v1436_v60 = vmul.f32 %v1372_v52, %v1372_v52  ;;  %v1435_v0 = vmul.f32 %v1371_v58, %v1371_v58  ;;  %v1373_v11 = vsub.f32 %v674_v56, %v2947_v29 }
 0x13f   : > { %v1530_v62 = vsel %vm465_vm0, %v1438_v55, 0.0  ;;  %1519 = vadd.xlane.f32.xlu0 %v1518_v59  ;;  %v1512_v3 = vsel %vm465_vm0, %v1432_v57, 0.0  ;;  %v1433_v9 = vmul.f32 %v1369_v61, %v1369_v61  ;;  %v1439_v12 = vmul.f32 %v1375_v63, %v1375_v63 }
 0x140   : > { %1531 = vadd.xlane.f32.xlu1 %v1530_v62  ;;  %v1524_v10 = vsel %vm465_vm0, %v1436_v60, 0.0  ;;  %v1521_v13 = vsel %vm465_vm0, %v1435_v0, 0.0  ;;  %v1437_v15 = vmul.f32 %v1373_v11, %v1373_v11 }
 0x141   : > { %v1515_v14 = vsel %vm465_vm0, %v1433_v9, 0.0  ;;  %v1533_v21 = vsel %vm465_vm0, %v1439_v12, 0.0 }
 0x142   : > { %v1527_v32 = vsel %vm465_vm0, %v1437_v15, 0.0 }
 0x143   : > { %1513 = vadd.xlane.f32.xlu0 %v1512_v3 }
 0x144   : > { %1525 = vadd.xlane.f32.xlu1 %v1524_v10 }
 0x147   : > { %1522 = vadd.xlane.f32.xlu0 %v1521_v13 }
 0x148   : > { %1516 = vadd.xlane.f32.xlu1 %v1515_v14 }
 0x149   : > { %v2371_v16 = vpop.f32.mrb[8].mxu0 }
 0x14a   : > { %v1378_v18 = vsub.f32 %v2371_v16, %v2925_v6  ;;  %v2379_v19 = vpop.f32.mrb[8].mxu1  ;;  %v726_v20 = vpop.f32.mrb[9].mxu0 }
 0x14b   : > { %v1382_v22 = vsub.f32 %v2379_v19, %v2925_v6  ;;  %v1376_v23 = vsub.f32 %v726_v20, %v2928_v7  ;;  %v781_v24 = vpop.f32.mrb[9].mxu1  ;;  %1534 = vadd.xlane.f32.xlu0 %v1533_v21  ;;  %v2372_v25 = vpop.f32.mrb[10].mxu0 }
 0x14c   : > { %v1442_v26 = vmul.f32 %v1378_v18, %v1378_v18  ;;  %v2380_v27 = vpop.f32.mrb[10].mxu1  ;;  %v729_v28 = vpop.f32.mrb[11].mxu0  ;;  %v1380_v30 = vsub.f32 %v781_v24, %v2928_v7  ;;  %v1379_v38 = vsub.f32 %v2372_v25, %v2938_v17 }
 0x14d   : > { %v784_v31 = vpop.f32.mrb[11].mxu1  ;;  %v1446_v33 = vmul.f32 %v1382_v22, %v1382_v22  ;;  %v1440_v34 = vmul.f32 %v1376_v23, %v1376_v23  ;;  %v1377_v35 = vsub.f32 %v729_v28, %v2947_v29  ;;  %v1383_v43 = vsub.f32 %v2380_v27, %v2938_v17 }
 0x14e   : > { %v1542_v36 = vsel %vm465_vm0, %v1442_v26, 0.0  ;;  %v1444_v37 = vmul.f32 %v1380_v30, %v1380_v30  ;;  %v1381_v40 = vsub.f32 %v784_v31, %v2947_v29  ;;  %v1443_v44 = vmul.f32 %v1379_v38, %v1379_v38 }
 0x14f   : > { %1528 = vadd.xlane.f32.xlu0 %v1527_v32  ;;  %1543 = vadd.xlane.f32.xlu1 %v1542_v36  ;;  %v1441_v39 = vmul.f32 %v1377_v35, %v1377_v35  ;;  %v1554_v41 = vsel %vm465_vm0, %v1446_v33, 0.0  ;;  %v1536_v42 = vsel %vm465_vm0, %v1440_v34, 0.0  ;;  %v1447_v48 = vmul.f32 %v1383_v43, %v1383_v43 }
 0x150   : > { %v1445_v45 = vmul.f32 %v1381_v40, %v1381_v40  ;;  %v1548_v46 = vsel %vm465_vm0, %v1444_v37, 0.0  ;;  %v1545_v53 = vsel %vm465_vm0, %v1443_v44, 0.0 }
 0x151   : > { %v1539_v47 = vsel %vm465_vm0, %v1441_v39, 0.0  ;;  %v1557_v0 = vsel %vm465_vm0, %v1447_v48, 0.0 }
 0x152   : > { %v1551_v54 = vsel %vm465_vm0, %v1445_v45, 0.0 }
 0x153   : > { %1555 = vadd.xlane.f32.xlu1 %v1554_v41  ;;  %1537 = vadd.xlane.f32.xlu0 %v1536_v42 }
 0x157   : > { %1549 = vadd.xlane.f32.xlu0 %v1548_v46  ;;  %1540 = vadd.xlane.f32.xlu1 %v1539_v47 }
 0x159   : > { %v2387_v49 = vpop.f32.mrb[12].mxu0 }
 0x15a   : > { %v1386_v50 = vsub.f32 %v2387_v49, %v2925_v6  ;;  %v2395_v51 = vpop.f32.mrb[12].mxu1  ;;  %v836_v52 = vpop.f32.mrb[13].mxu0 }
 0x15b   : > { %v1390_v55 = vsub.f32 %v2395_v51, %v2925_v6  ;;  %v1384_v56 = vsub.f32 %v836_v52, %v2928_v7  ;;  %v891_v57 = vpop.f32.mrb[13].mxu1  ;;  %1546 = vadd.xlane.f32.xlu0 %v1545_v53  ;;  %1552 = vadd.xlane.f32.xlu1 %v1551_v54  ;;  %v2388_v58 = vpop.f32.mrb[14].mxu0 }
 0x15c   : > { %v1450_v59 = vmul.f32 %v1386_v50, %v1386_v50  ;;  %v2396_v60 = vpop.f32.mrb[14].mxu1  ;;  %v839_v61 = vpop.f32.mrb[15].mxu0  ;;  %v1388_v62 = vsub.f32 %v891_v57, %v2928_v7  ;;  %v1387_v12 = vsub.f32 %v2388_v58, %v2938_v17 }
 0x15d   : > { %v894_v63 = vpop.f32.mrb[15].mxu1  ;;  %v1454_v3 = vmul.f32 %v1390_v55, %v1390_v55  ;;  %v1448_v4 = vmul.f32 %v1384_v56, %v1384_v56  ;;  %v1385_v9 = vsub.f32 %v839_v61, %v2947_v29  ;;  %v1391_v18 = vsub.f32 %v2396_v60, %v2938_v17 }
 0x15e   : > { %v1566_v10 = vsel %vm465_vm0, %v1450_v59, 0.0  ;;  %v1452_v11 = vmul.f32 %v1388_v62, %v1388_v62  ;;  %v1389_v14 = vsub.f32 %v894_v63, %v2947_v29  ;;  %v1451_v19 = vmul.f32 %v1387_v12, %v1387_v12 }
 0x15f   : > { %1558 = vadd.xlane.f32.xlu0 %v1557_v0  ;;  %1567 = vadd.xlane.f32.xlu1 %v1566_v10  ;;  %v1449_v13 = vmul.f32 %v1385_v9, %v1385_v9  ;;  %v1578_v15 = vsel %vm465_vm0, %v1454_v3, 0.0  ;;  %v1560_v16 = vsel %vm465_vm0, %v1448_v4, 0.0  ;;  %v1455_v24 = vmul.f32 %v1391_v18, %v1391_v18 }
 0x160   : > { %v1453_v20 = vmul.f32 %v1389_v14, %v1389_v14  ;;  %v1572_v21 = vsel %vm465_vm0, %v1452_v11, 0.0  ;;  %v1569_v28 = vsel %vm465_vm0, %v1451_v19, 0.0 }
 0x161   : > { %v1563_v22 = vsel %vm465_vm0, %v1449_v13, 0.0  ;;  %v1581_v41 = vsel %vm465_vm0, %v1455_v24, 0.0 }
 0x162   : > { %v1575_v30 = vsel %vm465_vm0, %v1453_v20, 0.0 }
 0x163   : > { %1579 = vadd.xlane.f32.xlu1 %v1578_v15  ;;  %1561 = vadd.xlane.f32.xlu0 %v1560_v16 }
 0x167   : > { %1573 = vadd.xlane.f32.xlu0 %v1572_v21  ;;  %1564 = vadd.xlane.f32.xlu1 %v1563_v22 }
 0x169   : > { %v2403_v23 = vpop.f32.mrb[16].mxu0 }
 0x16a   : > { %v1394_v25 = vsub.f32 %v2403_v23, %v2925_v6  ;;  %v2411_v26 = vpop.f32.mrb[16].mxu1  ;;  %v946_v27 = vpop.f32.mrb[17].mxu0 }
 0x16b   : > { %v1398_v31 = vsub.f32 %v2411_v26, %v2925_v6  ;;  %v1001_v32 = vpop.f32.mrb[17].mxu1  ;;  %1570 = vadd.xlane.f32.xlu0 %v1569_v28  ;;  %1576 = vadd.xlane.f32.xlu1 %v1575_v30  ;;  %v2404_v33 = vpop.f32.mrb[18].mxu0  ;;  %v1392_v40 = vsub.f32 %v946_v27, %v2928_v7 }
 0x16c   : > { %v2412_v34 = vpop.f32.mrb[18].mxu1  ;;  %v1395_v35 = vsub.f32 %v2404_v33, %v2938_v17  ;;  %v949_v36 = vpop.f32.mrb[19].mxu0  ;;  %v1458_v39 = vmul.f32 %v1394_v25, %v1394_v25  ;;  %v1396_v46 = vsub.f32 %v1001_v32, %v2928_v7 }
 0x16d   : > { %v1462_v37 = vmul.f32 %v1398_v31, %v1398_v31  ;;  %v1004_v38 = vpop.f32.mrb[19].mxu1  ;;  %v1393_v43 = vsub.f32 %v949_v36, %v2947_v29  ;;  %v1456_v45 = vmul.f32 %v1392_v40, %v1392_v40  ;;  %v1399_v52 = vsub.f32 %v2412_v34, %v2938_v17 }
 0x16e   : > { %v1459_v42 = vmul.f32 %v1395_v35, %v1395_v35  ;;  %v1590_v47 = vsel %vm465_vm0, %v1458_v39, 0.0  ;;  %v1397_v49 = vsub.f32 %v1004_v38, %v2947_v29  ;;  %v1460_v51 = vmul.f32 %v1396_v46, %v1396_v46 }
 0x16f   : > { %1582 = vadd.xlane.f32.xlu0 %v1581_v41  ;;  %v1602_v44 = vsel %vm465_vm0, %v1462_v37, 0.0  ;;  %v1457_v48 = vmul.f32 %v1393_v43, %v1393_v43  ;;  %v1584_v53 = vsel %vm465_vm0, %v1456_v45, 0.0  ;;  %v1463_v57 = vmul.f32 %v1399_v52, %v1399_v52 }
 0x170   : > { %1603 = vadd.xlane.f32.xlu1 %v1602_v44  ;;  %v1593_v50 = vsel %vm465_vm0, %v1459_v42, 0.0  ;;  %v1461_v54 = vmul.f32 %v1397_v49, %v1397_v49  ;;  %v1596_v61 = vsel %vm465_vm0, %v1460_v51, 0.0 }
 0x171   : > { %v1587_v55 = vsel %vm465_vm0, %v1457_v48, 0.0  ;;  %v1605_v16 = vsel %vm465_vm0, %v1463_v57, 0.0 }
 0x172   : > { %v1599_v3 = vsel %vm465_vm0, %v1461_v54, 0.0 }
 0x173   : > { %1591 = vadd.xlane.f32.xlu0 %v1590_v47 }
 0x174   : > { %1594 = vadd.xlane.f32.xlu1 %v1593_v50 }
 0x177   : > { %1585 = vadd.xlane.f32.xlu0 %v1584_v53 }
 0x178   : > { %1588 = vadd.xlane.f32.xlu1 %v1587_v55 }
 0x179   : > { %v2419_v56 = vpop.f32.mrb[20].mxu0 }
 0x17a   : > { %v1402_v58 = vsub.f32 %v2419_v56, %v2925_v6  ;;  %v1056_v59 = vpop.f32.mrb[21].mxu0  ;;  %v2427_v60 = vpop.f32.mrb[20].mxu1 }
 0x17b   : > { %v1400_v62 = vsub.f32 %v1056_v59, %v2928_v7  ;;  %v1406_v63 = vsub.f32 %v2427_v60, %v2925_v6  ;;  %v1111_v0 = vpop.f32.mrb[21].mxu1  ;;  %1597 = vadd.xlane.f32.xlu0 %v1596_v61  ;;  %v2420_v4 = vpop.f32.mrb[22].mxu0 }
 0x17c   : > { %v1466_v9 = vmul.f32 %v1402_v58, %v1402_v58  ;;  %1600 = vadd.xlane.f32.xlu1 %v1599_v3  ;;  %v1059_v10 = vpop.f32.mrb[23].mxu0  ;;  %v2428_v11 = vpop.f32.mrb[22].mxu1  ;;  %v1404_v15 = vsub.f32 %v1111_v0, %v2928_v7  ;;  %v1403_v22 = vsub.f32 %v2420_v4, %v2938_v17 }
 0x17d   : > { %v1470_v12 = vmul.f32 %v1406_v63, %v1406_v63  ;;  %v1114_v13 = vpop.f32.mrb[23].mxu1  ;;  %v1464_v14 = vmul.f32 %v1400_v62, %v1400_v62  ;;  %v1401_v19 = vsub.f32 %v1059_v10, %v2947_v29  ;;  %v1407_v27 = vsub.f32 %v2428_v11, %v2938_v17 }
 0x17e   : > { %v1614_v18 = vsel %vm465_vm0, %v1466_v9, 0.0  ;;  %v1468_v21 = vmul.f32 %v1404_v15, %v1404_v15  ;;  %v1405_v25 = vsub.f32 %v1114_v13, %v2947_v29  ;;  %v1467_v26 = vmul.f32 %v1403_v22, %v1403_v22 }
 0x17f   : > { %1606 = vadd.xlane.f32.xlu0 %v1605_v16  ;;  %v1626_v20 = vsel %vm465_vm0, %v1470_v12, 0.0  ;;  %v1608_v23 = vsel %vm465_vm0, %v1464_v14, 0.0  ;;  %v1465_v24 = vmul.f32 %v1401_v19, %v1401_v19  ;;  %v1471_v33 = vmul.f32 %v1407_v27, %v1407_v27 }
 0x180   : > { %1615 = vadd.xlane.f32.xlu1 %v1614_v18  ;;  %v1620_v28 = vsel %vm465_vm0, %v1468_v21, 0.0  ;;  %v1469_v30 = vmul.f32 %v1405_v25, %v1405_v25  ;;  %v1617_v37 = vsel %vm465_vm0, %v1467_v26, 0.0 }
 0x181   : > { %v1611_v31 = vsel %vm465_vm0, %v1465_v24, 0.0  ;;  %v1629_v50 = vsel %vm465_vm0, %v1471_v33, 0.0 }
 0x182   : > { %v1623_v41 = vsel %vm465_vm0, %v1469_v30, 0.0 }
 0x183   : > { %1609 = vadd.xlane.f32.xlu0 %v1608_v23 }
 0x184   : > { %1627 = vadd.xlane.f32.xlu1 %v1626_v20 }
 0x187   : > { %1621 = vadd.xlane.f32.xlu0 %v1620_v28 }
 0x188   : > { %1612 = vadd.xlane.f32.xlu1 %v1611_v31 }
 0x189   : > { %v2435_v32 = vpop.f32.mrb[24].mxu0 }
 0x18a   : > { %v1410_v34 = vsub.f32 %v2435_v32, %v2925_v6  ;;  %v1166_v35 = vpop.f32.mrb[25].mxu0  ;;  %v2443_v36 = vpop.f32.mrb[24].mxu1 }
 0x18b   : > { %v1408_v38 = vsub.f32 %v1166_v35, %v2928_v7  ;;  %v1414_v39 = vsub.f32 %v2443_v36, %v2925_v6  ;;  %v1221_v40 = vpop.f32.mrb[25].mxu1  ;;  %1618 = vadd.xlane.f32.xlu0 %v1617_v37  ;;  %v2436_v42 = vpop.f32.mrb[26].mxu0 }
 0x18c   : > { %v1474_v43 = vmul.f32 %v1410_v34, %v1410_v34  ;;  %1624 = vadd.xlane.f32.xlu1 %v1623_v41  ;;  %v1169_v44 = vpop.f32.mrb[27].mxu0  ;;  %v2444_v45 = vpop.f32.mrb[26].mxu1  ;;  %v1412_v49 = vsub.f32 %v1221_v40, %v2928_v7  ;;  %v1411_v55 = vsub.f32 %v2436_v42, %v2938_v17  ;;  %v327_v42 = vld [vmem:[%s299_s9] sm:$0xff] }
 0x18d   : > { %v1478_v46 = vmul.f32 %v1414_v39, %v1414_v39  ;;  %v1224_v47 = vpop.f32.mrb[27].mxu1  ;;  %v1472_v48 = vmul.f32 %v1408_v38, %v1408_v38  ;;  %v1409_v52 = vsub.f32 %v1169_v44, %v2947_v29  ;;  %v1415_v60 = vsub.f32 %v2444_v45, %v2938_v17 }
 0x18e   : > { %v1638_v51 = vsel %vm465_vm0, %v1474_v43, 0.0  ;;  %v1476_v54 = vmul.f32 %v1412_v49, %v1412_v49  ;;  %v1413_v58 = vsub.f32 %v1224_v47, %v2947_v29  ;;  %v1475_v59 = vmul.f32 %v1411_v55, %v1411_v55  ;;  %v328_v43 = vld [vmem:[%s299_s9 + $0x8] sm:$0xff] }
 0x18f   : > { %1630 = vadd.xlane.f32.xlu0 %v1629_v50  ;;  %v1650_v53 = vsel %vm465_vm0, %v1478_v46, 0.0  ;;  %v1632_v56 = vsel %vm465_vm0, %v1472_v48, 0.0  ;;  %v1473_v57 = vmul.f32 %v1409_v52, %v1409_v52  ;;  %v1479_v3 = vmul.f32 %v1415_v60, %v1415_v60 }
 0x190   : > { %1639 = vadd.xlane.f32.xlu1 %v1638_v51  ;;  %v1644_v61 = vsel %vm465_vm0, %v1476_v54, 0.0  ;;  %v1477_v62 = vmul.f32 %v1413_v58, %v1413_v58  ;;  %v1641_v11 = vsel %vm465_vm0, %v1475_v59, 0.0 }
 0x191   : > { %v1635_v63 = vsel %vm465_vm0, %v1473_v57, 0.0  ;;  %v1653_v25 = vsel %vm465_vm0, %v1479_v3, 0.0  ;;  %v1755_v3 = vadd.s32 4294967280, %v2917_v2 }
 0x192   : > { %v1647_v15 = vsel %vm465_vm0, %v1477_v62, 0.0 }
 0x193   : > { %1633 = vadd.xlane.f32.xlu0 %v1632_v56 }
 0x194   : > { %1651 = vadd.xlane.f32.xlu1 %v1650_v53 }
 0x197   : > { %1645 = vadd.xlane.f32.xlu0 %v1644_v61  ;;  %v1748_v61 = vadd.s32 4294967288, %v2917_v2 }
 0x198   : > { %1636 = vadd.xlane.f32.xlu1 %v1635_v63 }
 0x199   : > { %v2451_v0 = vpop.f32.mrb[28].mxu0 }
 0x19a   : > { %v1418_v4 = vsub.f32 %v2451_v0, %v2925_v6  ;;  %v1276_v9 = vpop.f32.mrb[29].mxu0  ;;  %v2459_v10 = vpop.f32.mrb[28].mxu1  ;;  %v3093_v0 = vsub.s32 %v1748_v61, %v2915_v1 }
 0x19b   : > { %v1416_v12 = vsub.f32 %v1276_v9, %v2928_v7  ;;  %v1422_v13 = vsub.f32 %v2459_v10, %v2925_v6  ;;  %v1331_v14 = vpop.f32.mrb[29].mxu1  ;;  %1642 = vadd.xlane.f32.xlu0 %v1641_v11  ;;  %v2452_v16 = vpop.f32.mrb[30].mxu0  ;;  %v1762_v11 = vadd.s32 4294967272, %v2917_v2 }
 0x19c   : > { %v1482_v18 = vmul.f32 %v1418_v4, %v1418_v4  ;;  %1648 = vadd.xlane.f32.xlu1 %v1647_v15  ;;  %v1279_v19 = vpop.f32.mrb[31].mxu0  ;;  %v2460_v20 = vpop.f32.mrb[30].mxu1  ;;  %v1420_v24 = vsub.f32 %v1331_v14, %v2928_v7  ;;  %v1419_v30 = vsub.f32 %v2452_v16, %v2938_v17  ;;  %v3098_v4 = vsub.s32 %v2917_v2, %v2915_v1 }
 0x19d   : > { %v1486_v21 = vmul.f32 %v1422_v13, %v1422_v13  ;;  %v1334_v22 = vpop.f32.mrb[31].mxu1  ;;  %v1480_v23 = vmul.f32 %v1416_v12, %v1416_v12  ;;  %v1423_v6 = vsub.f32 %v2460_v20, %v2938_v17  ;;  %v1417_v32 = vsub.f32 %v1279_v19, %v2947_v29 }
 0x19e   : > { %v1662_v26 = vsel %vm465_vm0, %v1482_v18, 0.0  ;;  %v1484_v28 = vmul.f32 %v1420_v24, %v1420_v24  ;;  %v1483_v7 = vmul.f32 %v1419_v30, %v1419_v30  ;;  %v1421_v36 = vsub.f32 %v1334_v22, %v2947_v29 }
 0x19f   : > { %1654 = vadd.xlane.f32.xlu0 %v1653_v25  ;;  %v1674_v27 = vsel %vm465_vm0, %v1486_v21, 0.0  ;;  %v1656_v31 = vsel %vm465_vm0, %v1480_v23, 0.0  ;;  %v1487_v33 = vmul.f32 %v1423_v6, %v1423_v6  ;;  %v1481_v35 = vmul.f32 %v1417_v32, %v1417_v32 }
 0x1a0   : > { %1663 = vadd.xlane.f32.xlu1 %v1662_v26  ;;  %v1668_v34 = vsel %vm465_vm0, %v1484_v28, 0.0  ;;  %v1665_v17 = vsel %vm465_vm0, %v1483_v7, 0.0  ;;  %v1485_v38 = vmul.f32 %v1421_v36, %v1421_v36  ;;  %v3105_v13 = vsub.s32 %v1755_v3, %v2915_v1 }
 0x1a1   : > { %v1677_v37 = vsel %vm465_vm0, %v1487_v33, 0.0  ;;  %v1659_v39 = vsel %vm465_vm0, %v1481_v35, 0.0  ;;  %v3115_v20 = vsub.s32 %v1762_v11, %v2915_v1 }
 0x1a2   : > { %v1671_v40 = vsel %vm465_vm0, %v1485_v38, 0.0 }
 0x1a3   : > { %1657 = vadd.xlane.f32.xlu0 %v1656_v31 }
 0x1a4   : > { %1675 = vadd.xlane.f32.xlu1 %v1674_v27 }
 0x1a7   : > { %1669 = vadd.xlane.f32.xlu0 %v1668_v34 }
 0x1a8   : > { %1678 = vadd.xlane.f32.xlu1 %v1677_v37 }
 0x1ab   : > { %1666 = vadd.xlane.f32.xlu0 %v1665_v17 }
 0x1ac   : > { %1660 = vadd.xlane.f32.xlu1 %v1659_v39 }
 0x1b0   : > { %1672 = vadd.xlane.f32.xlu1 %v1671_v40 }
 0x1bc   : > { %v1496_v29 = vpop.xlane.xlu0 %1495 }
 0x1bd   : > { %v3079_v41 = vpop.xlane.xlu1 %1507  ;;  %v1759_v23 = vrot.slane %v1496_v29, %v3105_v13 }
 0x1be   : > { %v1781_v33 = vrot.slane %v3079_v41, %v3105_v13 }
 0x1c0   : > { %v1490_v44 = vpop.xlane.xlu0 %1489 }
 0x1c1   : > { %v1502_v45 = vpop.xlane.xlu1 %1501  ;;  %332 = vperm.xlu0 %2546, %v327_v42   ;;  %335 = vperm.xlu1 %2547, %v328_v43   ;;  %v1747_v14 = vrot.slane %v1490_v44, %v3098_v4 }
 0x1c2   : > { %v1772_v24 = vrot.slane %v1502_v45, %v3098_v4 }
 0x1c4   : > { %v1499_v46 = vpop.xlane.xlu0 %1498 }
 0x1c5   : > { %v3081_v47 = vpop.xlane.xlu1 %1510  ;;  %v1766_v7 = vrot.slane %v1499_v46, %v3115_v20 }
 0x1c6   : > { %v1786_v36 = vrot.slane %v3081_v47, %v3115_v20 }
 0x1c8   : > { %v1493_v48 = vpop.xlane.xlu0 %1492 }
 0x1c9   : > { %v1505_v49 = vpop.xlane.xlu1 %1504  ;;  %v1752_v12 = vrot.slane %v1493_v48, %v3093_v0 }
 0x1ca   : > { %v1776_v18 = vrot.slane %v1505_v49, %v3093_v0 }
 0x1cb   : > { %v1754_v21 = vsel %vm1753_vm5, %v1752_v12, %v1747_v14 }
 0x1cc   : > { %v1520_v50 = vpop.xlane.xlu0 %1519  ;;  %v1777_v28 = vsel %vm1753_vm5, %v1776_v18, %v1772_v24  ;;  %v1761_v30 = vsel %vm1760_vm6, %v1759_v23, %v1754_v21 }
 0x1cd   : > { %v1532_v51 = vpop.xlane.xlu1 %1531  ;;  %v1800_v34 = vrot.slane %v1520_v50, %v3105_v13  ;;  %v1782_v39 = vsel %vm1760_vm6, %v1781_v33, %v1777_v28  ;;  %v1768_v40 = vsel %vm1767_vm7, %v1766_v7, %v1761_v30 }
 0x1ce   : > { %v1819_v37 = vrot.slane %v1532_v51, %v3105_v13 }
 0x1d0   : > { %v1514_v52 = vpop.xlane.xlu0 %1513 }
 0x1d1   : > { %v1526_v53 = vpop.xlane.xlu1 %1525  ;;  %v1791_v25 = vrot.slane %v1514_v52, %v3098_v4  ;;  %v1787_v52 = vsel %vm1767_vm7, %v1786_v36, %v1782_v39 }
 0x1d2   : > { %v1810_v26 = vrot.slane %v1526_v53, %v3098_v4  ;;  %v2055_v11 = vsel %vm2054_vm8, %v1787_v52, %v1768_v40 }
 0x1d4   : > { %v3083_v54 = vpop.xlane.xlu0 %1522 }
 0x1d5   : > { %v1517_v55 = vpop.xlane.xlu1 %1516  ;;  %v1805_v29 = vrot.slane %v3083_v54, %v3115_v20 }
 0x1d6   : > { %v1795_v19 = vrot.slane %v1517_v55, %v3093_v0 }
 0x1d8   : > { %v3085_v56 = vpop.xlane.xlu0 %1534  ;;  %v1796_v31 = vsel %vm1753_vm5, %v1795_v19, %v1791_v25 }
 0x1d9   : > { %v1801_v41 = vsel %vm1760_vm6, %v1800_v34, %v1796_v31  ;;  %v1824_v48 = vrot.slane %v3085_v56, %v3115_v20 }
 0x1da   : > { %v1806_v53 = vsel %vm1767_vm7, %v1805_v29, %v1801_v41 }
 0x1db   : > { %v2057_v14 = vsel %vm2056_vm9, %v1806_v53, %v2055_v11 }
 0x1dc   : > { %v1529_v57 = vpop.xlane.xlu0 %1528  ;;  %v3087_v58 = vpop.xlane.xlu1 %1543 }
 0x1dd   : > { %v1814_v22 = vrot.slane %v1529_v57, %v3093_v0  ;;  %v1838_v49 = vrot.slane %v3087_v58, %v3105_v13 }
 0x1df   : > { %v1815_v35 = vsel %vm1753_vm5, %v1814_v22, %v1810_v26 }
 0x1e0   : > { %v3089_v59 = vpop.xlane.xlu1 %1555  ;;  %v1538_v60 = vpop.xlane.xlu0 %1537  ;;  %v1820_v44 = vsel %vm1760_vm6, %v1819_v37, %v1815_v35 }
 0x1e1   : > { %v1829_v17 = vrot.slane %v1538_v60, %v3098_v4  ;;  %v1825_v57 = vsel %vm1767_vm7, %v1824_v48, %v1820_v44  ;;  %v1857_v56 = vrot.slane %v3089_v59, %v3105_v13 }
 0x1e2   : > { %v2059_v19 = vsel %vm2058_vm10, %v1825_v57, %v2057_v14 }
 0x1e4   : > { %v1550_v62 = vpop.xlane.xlu0 %1549  ;;  %v1541_v63 = vpop.xlane.xlu1 %1540 }
 0x1e5   : > { %v1833_v32 = vrot.slane %v1541_v63, %v3093_v0  ;;  %v1848_v45 = vrot.slane %v1550_v62, %v3098_v4 }
 0x1e7   : > { %v1834_v46 = vsel %vm1753_vm5, %v1833_v32, %v1829_v17 }
 0x1e8   : > { %v3100_v9 = vpop.xlane.xlu0 %1546  ;;  %v1553_v10 = vpop.xlane.xlu1 %1552  ;;  %v1839_v58 = vsel %vm1760_vm6, %v1838_v49, %v1834_v46 }
 0x1e9   : > { %v1852_v38 = vrot.slane %v1553_v10, %v3093_v0  ;;  %v1843_v50 = vrot.slane %v3100_v9, %v3115_v20 }
 0x1eb   : > { %v1853_v54 = vsel %vm1753_vm5, %v1852_v38, %v1848_v45  ;;  %v1844_v12 = vsel %vm1767_vm7, %v1843_v50, %v1839_v58 }
 0x1ec   : > { %v3108_v15 = vpop.xlane.xlu0 %1558  ;;  %v3110_v16 = vpop.xlane.xlu1 %1567  ;;  %v1858_v59 = vsel %vm1760_vm6, %v1857_v56, %v1853_v54  ;;  %v2061_v24 = vsel %vm2060_vm11, %v1844_v12, %v2059_v19 }
 0x1ed   : > { %v1862_v55 = vrot.slane %v3108_v15, %v3115_v20  ;;  %v1876_v63 = vrot.slane %v3110_v16, %v3105_v13 }
 0x1ef   : > { %v1863_v15 = vsel %vm1767_vm7, %v1862_v55, %v1858_v59 }
 0x1f0   : > { %v3123_v6 = vpop.xlane.xlu1 %1579  ;;  %v1562_v27 = vpop.xlane.xlu0 %1561  ;;  %v2063_v28 = vsel %vm2062_vm12, %v1863_v15, %v2061_v24 }
 0x1f1   : > { %v1867_v51 = vrot.slane %v1562_v27, %v3098_v4  ;;  %v1895_v21 = vrot.slane %v3123_v6, %v3105_v13 }
 0x1f4   : > { %v1574_v42 = vpop.xlane.xlu0 %1573  ;;  %v1565_v43 = vpop.xlane.xlu1 %1564 }
 0x1f5   : > { %v1871_v47 = vrot.slane %v1565_v43, %v3093_v0  ;;  %v1886_v3 = vrot.slane %v1574_v42, %v3098_v4 }
 0x1f7   : > { %v1872_v60 = vsel %vm1753_vm5, %v1871_v47, %v1867_v51 }
 0x1f8   : > { %v1571_v61 = vpop.xlane.xlu0 %1570  ;;  %v1577_v62 = vpop.xlane.xlu1 %1576  ;;  %v1877_v18 = vsel %vm1760_vm6, %v1876_v63, %v1872_v60 }
 0x1f9   : > { %v1881_v9 = vrot.slane %v1571_v61, %v3115_v20  ;;  %v1890_v10 = vrot.slane %v1577_v62, %v3093_v0 }
 0x1fb   : > { %v1891_v16 = vsel %vm1753_vm5, %v1890_v10, %v1886_v3  ;;  %v1882_v22 = vsel %vm1767_vm7, %v1881_v9, %v1877_v18 }
 0x1fc   : > { %v1583_v23 = vpop.xlane.xlu0 %1582  ;;  %v1896_v27 = vsel %vm1760_vm6, %v1895_v21, %v1891_v16  ;;  %v2065_v31 = vsel %vm2064_vm13, %v1882_v22, %v2063_v28 }
 0x1fd   : > { %v1900_v25 = vrot.slane %v1583_v23, %v3115_v20  ;;  %v1604_v26 = vpop.xlane.xlu1 %1603 }
 0x1fe   : > { %v1933_v60 = vrot.slane %v1604_v26, %v3105_v13 }
 0x1ff   : > { %v1901_v30 = vsel %vm1767_vm7, %v1900_v25, %v1896_v27 }
 0x200   : > { %v1592_v32 = vpop.xlane.xlu0 %1591  ;;  %v2067_v6 = vsel %vm2066_vm14, %v1901_v30, %v2065_v31 }
 0x201   : > { %v1595_v33 = vpop.xlane.xlu1 %1594  ;;  %v2077_v7 = vsel %vm465_vm0, %v2067_v6, 0.0  ;;  %v1914_v61 = vrot.slane %v1592_v32, %v3105_v13 }
 0x202   : > { %2078 = vadd.xlane.f32.xlu1 %v2077_v7  ;;  %v1919_v12 = vrot.slane %v1595_v33, %v3115_v20 }
 0x204   : > { %v1586_v34 = vpop.xlane.xlu0 %1585 }
 0x205   : > { %v1589_v35 = vpop.xlane.xlu1 %1588  ;;  %v1905_v46 = vrot.slane %v1586_v34, %v3098_v4 }
 0x206   : > { %v1909_v47 = vrot.slane %v1589_v35, %v3093_v0 }
 0x208   : > { %v1598_v36 = vpop.xlane.xlu0 %1597  ;;  %v1910_v55 = vsel %vm1753_vm5, %v1909_v47, %v1905_v46 }
 0x209   : > { %v1601_v37 = vpop.xlane.xlu1 %1600  ;;  %v1924_v48 = vrot.slane %v1598_v36, %v3098_v4  ;;  %v1915_v59 = vsel %vm1760_vm6, %v1914_v61, %v1910_v55 }
 0x20a   : > { %v1928_v49 = vrot.slane %v1601_v37, %v3093_v0  ;;  %v1920_v25 = vsel %vm1767_vm7, %v1919_v12, %v1915_v59 }
 0x20c   : > { %v1607_v17 = vpop.xlane.xlu0 %1606  ;;  %v1929_v57 = vsel %vm1753_vm5, %v1928_v49, %v1924_v48  ;;  %v342_v49 = vstv %s2225_s11 }
 0x20d   : > { %v1616_v38 = vpop.xlane.xlu1 %1615  ;;  %v1938_v56 = vrot.slane %v1607_v17, %v3115_v20  ;;  %v1934_v14 = vsel %vm1760_vm6, %v1933_v60, %v1929_v57  ;;  %v343_v55 = vadd.s32 %v342_v49, %v2915_v1 }
 0x20e   : > { %v1952_v3 = vrot.slane %v1616_v38, %v3105_v13 }
 0x20f   : > { %v1939_v16 = vsel %vm1767_vm7, %v1938_v56, %v1934_v14  ;;  %v344_v56 = vadd.s32 %v342_v49, %v2932_v8  ;;  %vm345_vm15 = vcmp.lt.s32.totalorder %v343_v55, 20 }
 0x210   : > { %v1610_v39 = vpop.xlane.xlu0 %1609  ;;  %v2068_v31 = vsel %vm2054_vm8, %v1939_v16, %v1920_v25 }
 0x211   : > { %v1628_v40 = vpop.xlane.xlu1 %1627  ;;  %v1943_v53 = vrot.slane %v1610_v39, %v3098_v4  ;;  %vm346_vm1 = vcmp.lt.s32.totalorder %v344_v56, 20 }
 0x212   : > { %v1971_v15 = vrot.slane %v1628_v40, %v3105_v13 }
 0x214   : > { %v1622_v29 = vpop.xlane.xlu0 %1621 }
 0x215   : > { %v1613_v41 = vpop.xlane.xlu1 %1612  ;;  %v1962_v58 = vrot.slane %v1622_v29, %v3098_v4 }
 0x216   : > { %v1947_v50 = vrot.slane %v1613_v41, %v3093_v0 }
 0x218   : > { %v1619_v42 = vpop.xlane.xlu0 %1618  ;;  %v1948_v62 = vsel %vm1753_vm5, %v1947_v50, %v1943_v53 }
 0x219   : > { %v1625_v43 = vpop.xlane.xlu1 %1624  ;;  %v1957_v63 = vrot.slane %v1619_v42, %v3115_v20  ;;  %v1953_v19 = vsel %vm1760_vm6, %v1952_v3, %v1948_v62 }
 0x21a   : > { %v1966_v51 = vrot.slane %v1625_v43, %v3093_v0 }
 0x21b   : > { %v1958_v23 = vsel %vm1767_vm7, %v1957_v63, %v1953_v19 }
 0x21c   : > { %v1631_v44 = vpop.xlane.xlu0 %1630  ;;  %v1967_v9 = vsel %vm1753_vm5, %v1966_v51, %v1962_v58  ;;  %v2069_v33 = vsel %vm2056_vm9, %v1958_v23, %v2068_v31 }
 0x21d   : > { %v1640_v45 = vpop.xlane.xlu1 %1639  ;;  %v1976_v10 = vrot.slane %v1631_v44, %v3115_v20  ;;  %v1972_v24 = vsel %vm1760_vm6, %v1971_v15, %v1967_v9 }
 0x21e   : > { %v1990_v27 = vrot.slane %v1640_v45, %v3105_v13 }
 0x21f   : > { %v1977_v26 = vsel %vm1767_vm7, %v1976_v10, %v1972_v24 }
 0x220   : > { %v1634_v52 = vpop.xlane.xlu0 %1633  ;;  %v2070_v36 = vsel %vm2058_vm10, %v1977_v26, %v2069_v33 }
 0x221   : > { %v1652_v54 = vpop.xlane.xlu1 %1651  ;;  %v1981_v21 = vrot.slane %v1634_v52, %v3098_v4 }
 0x222   : > { %v2009_v17 = vrot.slane %v1652_v54, %v3105_v13 }
 0x224   : > { %v1646_v11 = vpop.xlane.xlu0 %1645 }
 0x225   : > { %v1637_v18 = vpop.xlane.xlu1 %1636  ;;  %v2000_v7 = vrot.slane %v1646_v11, %v3098_v4  ;;  %v325_v11 = vld [vmem:[%s283_s20] sm:$0xff] }
 0x226   : > { %v1985_v22 = vrot.slane %v1637_v18, %v3093_v0 }
 0x228   : > { %v1986_v28 = vsel %vm1753_vm5, %v1985_v22, %v1981_v21  ;;  %v1643_v30 = vpop.xlane.xlu0 %1642 }
 0x229   : > { %v1995_v32 = vrot.slane %v1643_v30, %v3115_v20  ;;  %v1649_v6 = vpop.xlane.xlu1 %1648  ;;  %v1991_v34 = vsel %vm1760_vm6, %v1990_v27, %v1986_v28 }
 0x22a   : > { %v2004_v35 = vrot.slane %v1649_v6, %v3093_v0 }
 0x22b   : > { %v1996_v37 = vsel %vm1767_vm7, %v1995_v32, %v1991_v34 }
 0x22c   : > { %v2071_v38 = vsel %vm2060_vm11, %v1996_v37, %v2070_v36  ;;  %v2005_v39 = vsel %vm1753_vm5, %v2004_v35, %v2000_v7  ;;  %v1655_v40 = vpop.xlane.xlu0 %1654 }
 0x22d   : > { %v2014_v29 = vrot.slane %v1655_v40, %v3115_v20  ;;  %v1664_v41 = vpop.xlane.xlu1 %1663  ;;  %v2010_v42 = vsel %vm1760_vm6, %v2009_v17, %v2005_v39 }
 0x22e   : > { %v2028_v54 = vrot.slane %v1664_v41, %v3105_v13 }
 0x22f   : > { %v2015_v43 = vsel %vm1767_vm7, %v2014_v29, %v2010_v42 }
 0x230   : > { %v1658_v44 = vpop.xlane.xlu0 %1657  ;;  %v2072_v45 = vsel %vm2062_vm12, %v2015_v43, %v2071_v38 }
 0x231   : > { %v1676_v46 = vpop.xlane.xlu1 %1675  ;;  %v2019_v51 = vrot.slane %v1658_v44, %v3098_v4 }
 0x232   : > { %v2047_v1 = vrot.slane %v1676_v46, %v3105_v13 }
 0x234   : > { %v1670_v47 = vpop.xlane.xlu0 %1669 }
 0x235   : > { %v1679_v48 = vpop.xlane.xlu1 %1678  ;;  %v2038_v62 = vrot.slane %v1670_v47, %v3098_v4 }
 0x236   : > { %v2052_v8 = vrot.slane %v1679_v48, %v3115_v20 }
 0x238   : > { %v1667_v52 = vpop.xlane.xlu0 %1666 }
 0x239   : > { %v1661_v50 = vpop.xlane.xlu1 %1660  ;;  %v2033_v58 = vrot.slane %v1667_v52, %v3115_v20 }
 0x23a   : > { %v2023_v53 = vrot.slane %v1661_v50, %v3093_v0 }
 0x23c   : > { %v2024_v57 = vsel %vm1753_vm5, %v2023_v53, %v2019_v51 }
 0x23d   : > { %v2029_v60 = vsel %vm1760_vm6, %v2028_v54, %v2024_v57  ;;  %v1673_v61 = vpop.xlane.xlu1 %1672 }
 0x23e   : > { %v2042_v63 = vrot.slane %v1673_v61, %v3093_v0  ;;  %v2034_v3 = vsel %vm1767_vm7, %v2033_v58, %v2029_v60  ;;  %v326_v0 = vld [vmem:[%s283_s20 + $0x8] sm:$0xff] }
 0x23f   : > { %v2073_v13 = vsel %vm2064_vm13, %v2034_v3, %v2072_v45 }
 0x240   : > { %v2043_v9 = vsel %vm1753_vm5, %v2042_v63, %v2038_v62  ;;  %v333_v10 = vpop.permute.xlu0 %332 }
 0x241   : > { %vm337_vm2 = vcmp.eq.s32.totalorder %v2917_v2, %v333_v10  ;;  %v2048_v12 = vsel %vm1760_vm6, %v2047_v1, %v2043_v9  ;;  %v336_v59 = vpop.permute.xlu1 %335  ;;  %vm321_vm6 = vcmask 0  }
 0x242   : > { %vm351_vm4 = vmand %vm337_vm2, %vm345_vm15  ;;  %v2053_v4 = vsel %vm1767_vm7, %v2052_v8, %v2048_v12  ;;  %vm338_vm5 = vcmp.eq.s32.totalorder %v2917_v2, %v336_v59  ;;  %322 = vst.msk [vmem:[%s3270_s25] sm:$0x1] %vm321_vm6, %v2635_v5 }
 0x243   : > { %v2074_v20 = vsel %vm2066_vm14, %v2053_v4, %v2073_v13  ;;  %vm352_vm8 = vmand %vm338_vm5, %vm346_vm1  ;;  %v353_v14 = vsel %vm351_vm4, %v325_v11, 0.0 }
 0x244   : > { %v2080_v15 = vsel %vm465_vm0, %v2074_v20, 0.0  ;;  %v356_v18 = vsel %vm355_vm3, %v353_v14, 0.0  ;;  %v354_v16 = vsel %vm352_vm8, %v326_v0, 0.0 }
 0x245   : > { %2081 = vadd.xlane.f32.xlu0 %v2080_v15  ;;  %357 = vadd.xlane.f32.xlu1 %v356_v18  ;;  %v359_v19 = vsel %vm355_vm3, %v354_v16, 0.0 }
 0x249   : > { %360 = vadd.xlane.f32.xlu1 %v359_v19  ;;  %v2106_v48 = vld [vmem:[%s3270_s25] sm:$0x1] }
 0x28f   : > { %v2079_v2 = vpop.xlane.xlu1 %2078 }
 0x290   : > { %v2083_v21 = vsel %vm345_vm15, %v2079_v2, 0.0 }
 0x291   : > { %2548 = vrsqrt.f32 %v2083_v21  ;;  %vm2087_vm0 = vcmp.eq.f32.partialorder %v2083_v21, inf  ;;  %v2090_v5 = vand.u32 2147483648, %v2083_v21  ;;  %vm2089_vm9 = vcmp.eq.f32.partialorder %v2083_v21, 0.0 }
 0x29b   : > { %v2549_v27 = vpop.eup %2548 }
 0x29c   : > { %v2086_v30 = vmul.f32 %v2549_v27, %v2083_v21 }
 0x29e   : > { %v2088_v6 = vsel %vm2087_vm0, %v2083_v21, %v2086_v30 }
 0x29f   : > { %v2091_v36 = vsel %vm2089_vm9, %v2090_v5, %v2088_v6 }
 0x2d2   : > { %v2082_v22 = vpop.xlane.xlu0 %2081  ;;  %v358_v23 = vpop.xlane.xlu1 %357 }
 0x2d3   : > { %v2084_v24 = vsel %vm346_vm1, %v2082_v22, 0.0 }
 0x2d4   : > { %2550 = vrsqrt.f32 %v2084_v24  ;;  %vm2094_vm7 = vcmp.eq.f32.partialorder %v2084_v24, inf  ;;  %v2097_v7 = vand.u32 2147483648, %v2084_v24  ;;  %vm2096_vm10 = vcmp.eq.f32.partialorder %v2084_v24, 0.0 }
 0x2d6   : > { %v361_v25 = vpop.xlane.xlu1 %360 }
 0x2d7   : > { %v362_v26 = vadd.f32 %v361_v25, %v358_v23 }
 0x2d9   : > { %v363_v28 = vrot.slane %v362_v26, 4 }
 0x2db   : > { %v364_v31 = vadd.f32 %v363_v28, %v362_v26 }
 0x2dd   : > { %v365_v35 = vrot.slane %v364_v31, 2 }
 0x2de   : > { %v2551_v32 = vpop.eup %2550 }
 0x2df   : > { %v2093_v33 = vmul.f32 %v2551_v32, %v2084_v24  ;;  %v366_v39 = vadd.f32 %v365_v35, %v364_v31 }
 0x2e1   : > { %v2095_v34 = vsel %vm2094_vm7, %v2084_v24, %v2093_v33  ;;  %v367_v41 = vrot.slane %v366_v39, 1 }
 0x2e2   : > { %v2098_v37 = vsel %vm2096_vm10, %v2097_v7, %v2095_v34 }
 0x2e3   : > { %v2099_v17 = vadd.f32 %v2098_v37, %v2091_v36  ;;  %v368_v44 = vadd.f32 %v367_v41, %v366_v39 }
 0x2e5   : > { %v2100_v38 = vrot.slane %v2099_v17, 4  ;;  %v2108_v47 = vmul.f32 0.05, %v368_v44 }
 0x2e7   : > { %v2101_v40 = vadd.f32 %v2100_v38, %v2099_v17 }
 0x2e9   : > { %v2102_v29 = vrot.slane %v2101_v40, 2 }
 0x2eb   : > { %v2103_v42 = vadd.f32 %v2102_v29, %v2101_v40 }
 0x2ed   : > { %v2104_v43 = vrot.slane %v2103_v42, 1 }
 0x2ef   : > { %v2105_v45 = vadd.f32 %v2104_v43, %v2103_v42 }
 0x2f1   : > { %v2107_v46 = vmul.f32 5e-05, %v2105_v45 }
 0x2f3   : > { %v2109_v49 = vsub.f32 %v2107_v46, %v2108_v47 }
 0x2f5   : > { %v2110_v50 = vadd.f32 %v2109_v49, %v2106_v48 }
 0x2f7   : > { %2112 = vst.msk [vmem:[%s3270_s25] sm:$0x1] %vm321_vm6, %v2110_v50 }
 0x2f8 PF: > { %s16_s17 = sadd.s32 1, %s2630_s17   ;;  %s3303_s12 = smov %s2614_s13 }
 0x2f9   : > { %p13_p4 = scmp.ge.s32.totalorder %s16_s17, 4   ;;  %s3304_s13 = smov %s2618_s14 }
 0x2fa   : > { %s3305_s14 = smov %s2701_s23  ;;  %s3306_s15 = smov %s2626_s16 }
 0x2fb   : > { %s3307_s16 = smov %s3309_s19  ;;  %15 = sbr.rel (!%p13_p4) target bundleno = 4 (0x4), region = 82 }
 0x302   :  { %2130 = vsyncpa [#allocation3], 1 }
 0x303   :  { %2132 = vsyncpa [#allocation3 + $0x1], 1 }

</bundles_post_ra>
